<compile_context>
chip_gen: v7x
topology: tpu7x:2x2x1
jax: 0.10.0
libtpu: 0.0.40
codegen_flags: <defaults>
</compile_context>

<pallas_src>
import math
import functools

import jax
import jax.numpy as jnp
from jax import lax
from jax.experimental import pallas as pl
from jax.experimental.pallas import tpu as pltpu


@functools.lru_cache(maxsize=None)
def _vmem_limit():
    """Scoped-VMEM limit: 75% of physical VMEM (v7x: ~48 MiB, v5e/v6e: ~96 MiB)."""
    phys = None
    try:
        info = pltpu.get_tpu_info()
        phys = getattr(info, "vmem_capacity_bytes", None)
    except Exception:
        phys = None
    if not phys:
        return 48 * 1024 * 1024
    return int(phys) * 3 // 4


def _tile(dim, target):
    """Pick a tile that exactly divides `dim` (prefer `target`, else a 128-multiple, else full)."""
    if dim <= target:
        return dim
    if dim % target == 0:
        return target
    for t in range(target, 127, -128):
        if dim % t == 0:
            return t
    return dim  # TODO(synk): ragged dims fall back to a full-size block (fc_out is padded instead).


# --------------------------- tiled linear (+ReLU) --------------------------- #

def _linear_kernel(x_ref, w_ref, b_ref, o_ref, *maybe_acc, relu):
    # acc is the f32 scratch when present, otherwise the (resident, f32) output block.
    acc_ref = maybe_acc[0] if maybe_acc else o_ref
    k = pl.program_id(2)

    @pl.when(k == 0)
    def _():
        acc_ref[...] = jnp.broadcast_to(
            b_ref[...].astype(acc_ref.dtype), acc_ref.shape)

    acc_ref[...] += jnp.dot(
        x_ref[...].astype(jnp.bfloat16), w_ref[...],
        preferred_element_type=jnp.float32).astype(acc_ref.dtype)

    if relu or maybe_acc:
        @pl.when(k == pl.num_programs(2) - 1)
        def _():
            y = acc_ref[...]
            if relu:
                y = jnp.maximum(y, 0.0)
            o_ref[...] = y.astype(o_ref.dtype)


def linear(x, w, b, *, relu=False, out_dtype=jnp.float32, tm=512, tn=512, tk=1024):
    """y = relu?(x @ w + b).  w is bf16 in HBM; x cast to bf16 in-kernel; f32 accumulate."""
    M, K = x.shape
    N = w.shape[1]
    tm, tn, tk = _tile(M, tm), _tile(N, tn), _tile(K, tk)
    nk = K // tk
    # Accumulate directly into the resident f32 output block; only use a scratch
    # accumulator when a bf16 output needs multi-step K accumulation.
    use_acc = (out_dtype != jnp.float32) and (nk > 1)
    scratch = [pltpu.VMEM((tm, tn), jnp.float32)] if use_acc else []
    return pl.pallas_call(
        functools.partial(_linear_kernel, relu=relu),
        out_shape=jax.ShapeDtypeStruct((M, N), out_dtype),
        grid=(M // tm, N // tn, nk),
        in_specs=[
            pl.BlockSpec((tm, tk), lambda i, j, k: (i, k)),
            pl.BlockSpec((tk, tn), lambda i, j, k: (k, j)),
            pl.BlockSpec((1, tn), lambda i, j, k: (0, j)),
        ],
        out_specs=pl.BlockSpec((tm, tn), lambda i, j, k: (i, j)),
        scratch_shapes=scratch,
        compiler_params=pltpu.CompilerParams(
            dimension_semantics=("parallel", "parallel", "arbitrary"),
            vmem_limit_bytes=_vmem_limit()),
    )(x, w, b.reshape(1, N))


# ----------------- fused matmul + bias + residual + LayerNorm ---------------- #

def _matmul_res_ln_kernel(x_ref, w_ref, b_ref, r_ref, g_ref, be_ref, o_ref, acc_ref):
    # LayerNorm(res + x @ w + b), eps = 1e-5 (torch default), normalized over last dim.
    k = pl.program_id(1)

    @pl.when(k == 0)
    def _():
        acc_ref[...] = jnp.zeros_like(acc_ref)

    acc_ref[...] += jnp.dot(
        x_ref[...].astype(jnp.bfloat16), w_ref[...],
        preferred_element_type=jnp.float32)

    @pl.when(k == pl.num_programs(1) - 1)
    def _():
        y = acc_ref[...] + b_ref[...] + r_ref[...]
        mu = jnp.mean(y, axis=-1, keepdims=True)
        var = jnp.mean(jnp.square(y - mu), axis=-1, keepdims=True)
        yhat = (y - mu) * lax.rsqrt(var + 1e-5)
        o_ref[...] = (yhat * g_ref[...] + be_ref[...]).astype(o_ref.dtype)


def matmul_residual_layernorm(x, w, b, res, gamma, beta, *, tm=256, tk=1024):
    """LN(res + x @ w + b).  K-tiled so the (K, N) weight never has to fit VMEM whole."""
    M, K = x.shape
    N = w.shape[1]
    tm, tk = _tile(M, tm), _tile(K, tk)
    return pl.pallas_call(
        _matmul_res_ln_kernel,
        out_shape=jax.ShapeDtypeStruct((M, N), jnp.float32),
        grid=(M // tm, K // tk),
        in_specs=[
            pl.BlockSpec((tm, tk), lambda i, k: (i, k)),
            pl.BlockSpec((tk, N), lambda i, k: (k, 0)),
            pl.BlockSpec((1, N), lambda i, k: (0, 0)),
            pl.BlockSpec((tm, N), lambda i, k: (i, 0)),
            pl.BlockSpec((1, N), lambda i, k: (0, 0)),
            pl.BlockSpec((1, N), lambda i, k: (0, 0)),
        ],
        out_specs=pl.BlockSpec((tm, N), lambda i, k: (i, 0)),
        scratch_shapes=[pltpu.VMEM((tm, N), jnp.float32)],
        compiler_params=pltpu.CompilerParams(
            dimension_semantics=("parallel", "arbitrary"),
            vmem_limit_bytes=_vmem_limit()),
    )(x, w, b.reshape(1, N), res, gamma.reshape(1, N), beta.reshape(1, N))


# ----------------------- flash attention (online softmax) -------------------- #

def _flash_attn_kernel(*refs, scale, has_mask):
    if has_mask:
        q_ref, k_ref, v_ref, m_ref, o_ref, m_sc, l_sc, acc_sc = refs
    else:
        q_ref, k_ref, v_ref, o_ref, m_sc, l_sc, acc_sc = refs
        m_ref = None
    ki = pl.program_id(2)

    @pl.when(ki == 0)
    def _():
        m_sc[...] = jnp.full(m_sc.shape, -jnp.inf, m_sc.dtype)
        l_sc[...] = jnp.zeros_like(l_sc)
        acc_sc[...] = jnp.zeros_like(acc_sc)

    q = (q_ref[0] * scale).astype(jnp.bfloat16)          # scale folded into Q
    k = k_ref[0].astype(jnp.bfloat16)
    # contract on dim 1 of both operands -> no per-head K transpose/relayout.
    s = lax.dot_general(q, k, (((1,), (1,)), ((), ())),
                        preferred_element_type=jnp.float32)          # (tq, tk)
    if has_mask:
        s = jnp.where(m_ref[0] == 0.0, -1e9, s)           # masked_fill(mask == 0, -1e9)

    m_prev = m_sc[...]
    m_new = jnp.maximum(m_prev, jnp.max(s, axis=-1, keepdims=True))
    alpha = jnp.exp(m_prev - m_new)
    p = jnp.exp(s - m_new)
    l_sc[...] = alpha * l_sc[...] + jnp.sum(p, axis=-1, keepdims=True)
    acc_sc[...] = alpha * acc_sc[...] + jnp.dot(
        p.astype(jnp.bfloat16), v_ref[0].astype(jnp.bfloat16),
        preferred_element_type=jnp.float32)
    m_sc[...] = m_new

    @pl.when(ki == pl.num_programs(2) - 1)
    def _():
        o_ref[0] = (acc_sc[...] *
                    pl.reciprocal(l_sc[...], approx=True)).astype(o_ref.dtype)


def _prep_mask(mask):
    """Return mask as (Bm, Sqm, Sk) WITHOUT materializing broadcasts (Bm/Sqm may be 1)."""
    if mask is None:
        return None
    m = jnp.asarray(mask, jnp.float32)
    if m.ndim == 4:            # (B or 1, 1, Sq or 1, Sk): drop broadcast head dim
        m = m[:, 0]
    elif m.ndim == 2:
        m = m[None]
    return m


def attention(q, k, v, mask, n_heads, *, out_dtype=jnp.bfloat16):
    """Multi-head scaled-dot-product attention, head-major flash kernel."""
    B, Sq, D = q.shape
    Sk = k.shape[1]
    d_k = D // n_heads
    scale = 1.0 / math.sqrt(d_k)

    def to_heads(x, S):  # (B, S, D) -> (B*H, S, d_k); glue transposes stay in XLA.
        return (x.reshape(B, S, n_heads, d_k)
                 .transpose(0, 2, 1, 3)
                 .reshape(B * n_heads, S, d_k))

    qh, kh, vh = to_heads(q, Sq), to_heads(k, Sk), to_heads(v, Sk)

    m = _prep_mask(mask)
    has_mask = m is not None

    tq = _tile(Sq, 256)
    tk = _tile(Sk, 512)
    nbh = B * n_heads

    in_specs = [
        pl.BlockSpec((1, tq, d_k), lambda bh, qi, ki: (bh, qi, 0)),
        pl.BlockSpec((1, tk, d_k), lambda bh, qi, ki: (bh, ki, 0)),
        pl.BlockSpec((1, tk, d_k), lambda bh, qi, ki: (bh, ki, 0)),
    ]
    args = [qh, kh, vh]
    if has_mask:
        Bm, Sqm, _ = m.shape
        mq = tq if Sqm == Sq else 1

        def mask_map(bh, qi, ki):
            b_idx = (bh // n_heads) if Bm != 1 else 0
            q_idx = qi if Sqm == Sq else 0
            return (b_idx, q_idx, ki)

        in_specs.append(pl.BlockSpec((1, mq, tk), mask_map))
        args.append(m)

    kernel = functools.partial(_flash_attn_kernel, scale=scale, has_mask=has_mask)

    ctx = pl.pallas_call(
        kernel,
        out_shape=jax.ShapeDtypeStruct((nbh, Sq, d_k), out_dtype),
        grid=(nbh, Sq // tq, Sk // tk),
        in_specs=in_specs,
        out_specs=pl.BlockSpec((1, tq, d_k), lambda bh, qi, ki: (bh, qi, 0)),
        scratch_shapes=[
            pltpu.VMEM((tq, 1), jnp.float32),      # running max
            pltpu.VMEM((tq, 1), jnp.float32),      # running denom
            pltpu.VMEM((tq, d_k), jnp.float32),    # running context accumulator
        ],
        compiler_params=pltpu.CompilerParams(
            dimension_semantics=("parallel", "parallel", "arbitrary"),
            vmem_limit_bytes=_vmem_limit()),
    )(*args)

    return (ctx.reshape(B, n_heads, Sq, d_k)
               .transpose(0, 2, 1, 3)
               .reshape(B, Sq, D))


# ------------------------------ model (glue) -------------------------------- #

def positional_encoding(seq_len, d_model):
    position = jnp.arange(seq_len, dtype=jnp.float32)[:, None]
    div_term = jnp.exp(jnp.arange(0, d_model, 2, dtype=jnp.float32)
                       * (-math.log(10000.0) / d_model))
    pe = jnp.zeros((seq_len, d_model), jnp.float32)
    pe = pe.at[:, 0::2].set(jnp.sin(position * div_term))
    pe = pe.at[:, 1::2].set(jnp.cos(position * div_term))
    return pe  # (S, D)


def encoder_layer(p, x, mask, n_heads):
    B, S, D = x.shape
    x2 = x.reshape(B * S, D)
    # self-attention: fused QKV matmul -> flash attention -> fused (out-proj + residual + LN1)
    qkv = linear(x2, p["attn"]["wqkv"], p["attn"]["bqkv"],
                 out_dtype=jnp.bfloat16).reshape(B, S, 3 * D)
    q, k, v = qkv[..., :D], qkv[..., D:2 * D], qkv[..., 2 * D:]
    ctx = attention(q, k, v, mask, n_heads).reshape(B * S, D)
    x2 = matmul_residual_layernorm(ctx, p["attn"]["wo"], p["attn"]["bo"],
                                   x2, p["ln1"]["g"], p["ln1"]["b"])
    # feed-forward: linear1 + ReLU (bf16 hidden) -> fused (linear2 + residual + LN2)
    h = linear(x2, p["ff"]["w1"], p["ff"]["b1"], relu=True, out_dtype=jnp.bfloat16)
    x2 = matmul_residual_layernorm(h, p["ff"]["w2"], p["ff"]["b2"],
                                   x2, p["ln2"]["g"], p["ln2"]["b"])
    return x2.reshape(B, S, D)


def decoder_layer(p, x, enc_out, src_mask, tgt_mask, n_heads):
    B, St, D = x.shape
    Ss = enc_out.shape[1]
    x2 = x.reshape(B * St, D)
    # masked self-attention
    qkv = linear(x2, p["self_attn"]["wqkv"], p["self_attn"]["bqkv"],
                 out_dtype=jnp.bfloat16).reshape(B, St, 3 * D)
    q, k, v = qkv[..., :D], qkv[..., D:2 * D], qkv[..., 2 * D:]
    ctx = attention(q, k, v, tgt_mask, n_heads).reshape(B * St, D)
    x2 = matmul_residual_layernorm(ctx, p["self_attn"]["wo"], p["self_attn"]["bo"],
                                   x2, p["ln1"]["g"], p["ln1"]["b"])
    # cross-attention: Q from decoder state, fused K|V projection of encoder output
    q = linear(x2, p["cross_attn"]["wq"], p["cross_attn"]["bq"],
               out_dtype=jnp.bfloat16).reshape(B, St, D)
    kv = linear(enc_out.reshape(B * Ss, D), p["cross_attn"]["wkv"], p["cross_attn"]["bkv"],
                out_dtype=jnp.bfloat16).reshape(B, Ss, 2 * D)
    k, v = kv[..., :D], kv[..., D:]
    ctx = attention(q, k, v, src_mask, n_heads).reshape(B * St, D)
    x2 = matmul_residual_layernorm(ctx, p["cross_attn"]["wo"], p["cross_attn"]["bo"],
                                   x2, p["ln2"]["g"], p["ln2"]["b"])
    # feed-forward
    h = linear(x2, p["ff"]["w1"], p["ff"]["b1"], relu=True, out_dtype=jnp.bfloat16)
    x2 = matmul_residual_layernorm(h, p["ff"]["w2"], p["ff"]["b2"],
                                   x2, p["ln3"]["g"], p["ln3"]["b"])
    return x2.reshape(B, St, D)


def transformer_encoder(p, src, src_mask, n_heads):
    S = src.shape[1]
    x = jnp.take(p["emb"], src, axis=0)                    # (B, S, D)
    x = x + positional_encoding(S, x.shape[-1])[None]
    for lp in p["layers"]:
        x = encoder_layer(lp, x, src_mask, n_heads)
    return x


def transformer_decoder(p, tgt, enc_out, src_mask, tgt_mask, n_heads, tgt_vocab):
    S = tgt.shape[1]
    x = jnp.take(p["emb"], tgt, axis=0)
    x = x + positional_encoding(S, x.shape[-1])[None]
    for lp in p["layers"]:
        x = decoder_layer(lp, x, enc_out, src_mask, tgt_mask, n_heads)
    B, S, D = x.shape
    # vocab projection: weight is 128-padded at init; use a large tm so the vocab
    # matrix (largest tensor in the model) is streamed through VMEM only once/twice.
    logits = linear(x.reshape(B * S, D), p["fc_out"]["w"], p["fc_out"]["b"], tm=1024)
    return logits.reshape(B, S, -1)[..., :tgt_vocab]


@functools.partial(jax.jit, static_argnames=("n_heads", "tgt_vocab"))
def transformer_seq2seq(params, src, tgt, src_mask=None, tgt_mask=None, *,
                        n_heads, tgt_vocab):
    # TODO(synk): matches torch defaults — no causal mask is applied when tgt_mask=None.
    enc_out = transformer_encoder(params["encoder"], src, src_mask, n_heads)
    return transformer_decoder(params["decoder"], tgt, enc_out, src_mask, tgt_mask,
                               n_heads, tgt_vocab)


# --------------------------- parameter construction -------------------------- #

def init_params(key, src_vocab, tgt_vocab, d_model, n_heads, d_ff, num_layers):
    keys = iter(jax.random.split(key, 4096))

    def w_init(d_in, d_out):
        # matmul weights live in HBM as bf16 (MXU-native); biases stay f32.
        return (jax.random.normal(next(keys), (d_in, d_out), jnp.float32) * 0.02
                ).astype(jnp.bfloat16)

    def b_init(d_out):
        return jax.random.normal(next(keys), (d_out,), jnp.float32) * 0.02

    def ln():
        return {"g": jnp.ones((d_model,), jnp.float32),
                "b": jnp.zeros((d_model,), jnp.float32)}

    def self_mha():
        # Q/K/V stored as one fused (D, 3D) weight — mathematically identical to
        # three separate nn.Linear(d_model, d_model) projections.
        return {"wqkv": w_init(d_model, 3 * d_model), "bqkv": b_init(3 * d_model),
                "wo": w_init(d_model, d_model), "bo": b_init(d_model)}

    def cross_mha():
        return {"wq": w_init(d_model, d_model), "bq": b_init(d_model),
                "wkv": w_init(d_model, 2 * d_model), "bkv": b_init(2 * d_model),
                "wo": w_init(d_model, d_model), "bo": b_init(d_model)}

    def ff():
        return {"w1": w_init(d_model, d_ff), "b1": b_init(d_ff),
                "w2": w_init(d_ff, d_model), "b2": b_init(d_model)}

    def enc_layer():
        return {"attn": self_mha(), "ff": ff(), "ln1": ln(), "ln2": ln()}

    def dec_layer():
        return {"self_attn": self_mha(), "cross_attn": cross_mha(), "ff": ff(),
                "ln1": ln(), "ln2": ln(), "ln3": ln()}

    # fc_out: pad vocab to a multiple of 128 so the N axis always tiles cleanly.
    fc_w = w_init(d_model, tgt_vocab)
    fc_b = b_init(tgt_vocab)
    pad = (-tgt_vocab) % 128
    if pad:
        fc_w = jnp.pad(fc_w, ((0, 0), (0, pad)))
        fc_b = jnp.pad(fc_b, ((0, pad),))

    encoder = {
        "emb": jax.random.normal(next(keys), (src_vocab, d_model), jnp.float32) * 0.02,
        "layers": [enc_layer() for _ in range(num_layers)],
    }
    decoder = {
        "emb": jax.random.normal(next(keys), (tgt_vocab, d_model), jnp.float32) * 0.02,
        "layers": [dec_layer() for _ in range(num_layers)],
        "fc_out": {"w": fc_w, "b": fc_b},
    }
    return {"encoder": encoder, "decoder": decoder}


# ------------------------------------ main ----------------------------------- #

if __name__ == "__main__":
    src_vocab, tgt_vocab = 50, 60
    d_model, n_heads, d_ff, num_layers = 32, 4, 64, 2
    B, S_src, S_tgt = 2, 8, 8

    root = jax.random.PRNGKey(0)
    kp, ks, kt = jax.random.split(root, 3)
    params = init_params(kp, src_vocab, tgt_vocab, d_model, n_heads, d_ff, num_layers)

    src = jax.random.randint(ks, (B, S_src), 0, src_vocab, dtype=jnp.int32)
    tgt = jax.random.randint(kt, (B, S_tgt), 0, tgt_vocab, dtype=jnp.int32)

    # 1) default forward (src_mask=None, tgt_mask=None) — matches the PyTorch module's
    #    default call; the mask branch is compiled out entirely.
    logits = transformer_seq2seq(params, src, tgt, n_heads=n_heads, tgt_vocab=tgt_vocab)
    logits = jax.block_until_ready(logits)
    assert logits.shape == (B, S_tgt, tgt_vocab), logits.shape
    assert logits.dtype == jnp.float32
    assert bool(jnp.all(jnp.isfinite(logits)))

    # 2) masked forward — exercises the in-kernel masked_fill path (causal tgt mask,
    #    padding-style all-keep src mask), same semantics as passing masks to torch.
    tgt_mask = jnp.tril(jnp.ones((1, 1, S_tgt, S_tgt), jnp.float32))
    src_mask = jnp.ones((B, 1, 1, S_src), jnp.float32)
    logits_m = transformer_seq2seq(params, src, tgt, src_mask, tgt_mask,
                                   n_heads=n_heads, tgt_vocab=tgt_vocab)
    logits_m = jax.block_until_ready(logits_m)
    assert logits_m.shape == (B, S_tgt, tgt_vocab)
    assert bool(jnp.all(jnp.isfinite(logits_m)))

    print("KERNEL_OK")
</pallas_src>

<mosaic_0001>
module attributes {stable_mosaic.version = 11 : i64} {
  func.func @_linear_kernel(%arg0: i32, %arg1: i32, %arg2: i32, %arg3: memref<16x32xf32, #tpu.memory_space<vmem>>, %arg4: memref<32x96xbf16, #tpu.memory_space<vmem>>, %arg5: memref<1x96xf32, #tpu.memory_space<vmem>>, %arg6: memref<16x96xbf16, #tpu.memory_space<vmem>>) attributes {dimension_semantics = [#tpu.dimension_semantics<parallel>, #tpu.dimension_semantics<parallel>, #tpu.dimension_semantics<arbitrary>], iteration_bounds = array<i64: 1, 1, 1>, scalar_prefetch = 0 : i64, scratch_operands = 0 : i64, tpu.core_type = #tpu.core_type<tc>, window_params = [{transform_indices = @transform_0, window_bounds = array<i64: 16, 32>}, {transform_indices = @transform_1, window_bounds = array<i64: 32, 96>}, {transform_indices = @transform_2, window_bounds = array<i64: 1, 96>}, {transform_indices = @transform_3, window_bounds = array<i64: 16, 96>}]} {
    %c0_i32 = arith.constant 0 : i32
    %0 = arith.cmpi eq, %arg2, %c0_i32 : i32
    %1 = arith.extui %0 : i1 to i32
    %c0_i32_0 = arith.constant 0 : i32
    %2 = arith.cmpi ne, %1, %c0_i32_0 : i32
    scf.if %2 {
      %c0_8 = arith.constant 0 : index
      %c0_9 = arith.constant 0 : index
      %11 = vector.load %arg5[%c0_8, %c0_9] : memref<1x96xf32, #tpu.memory_space<vmem>>, vector<1x96xf32>
      %12 = arith.truncf %11 : vector<1x96xf32> to vector<1x96xbf16>
      %13 = vector.shape_cast %12 : vector<1x96xbf16> to vector<1x96xbf16>
      %14 = vector.broadcast %13 : vector<1x96xbf16> to vector<16x96xbf16>
      %c0_10 = arith.constant 0 : index
      %c0_11 = arith.constant 0 : index
      %15 = vector.load %arg6[%c0_10, %c0_11] : memref<16x96xbf16, #tpu.memory_space<vmem>>, vector<16x96xbf16>
      tpu.vector_store %arg6[%c0_10, %c0_11], %14 {strides = array<i32>} : memref<16x96xbf16, #tpu.memory_space<vmem>>, vector<16x96xbf16>,
    } else {
    }
    %c0 = arith.constant 0 : index
    %c0_1 = arith.constant 0 : index
    %3 = vector.load %arg6[%c0, %c0_1] : memref<16x96xbf16, #tpu.memory_space<vmem>>, vector<16x96xbf16>
    %c0_2 = arith.constant 0 : index
    %c0_3 = arith.constant 0 : index
    %4 = vector.load %arg3[%c0_2, %c0_3] : memref<16x32xf32, #tpu.memory_space<vmem>>, vector<16x32xf32>
    %5 = arith.truncf %4 : vector<16x32xf32> to vector<16x32xbf16>
    %c0_4 = arith.constant 0 : index
    %c0_5 = arith.constant 0 : index
    %6 = vector.load %arg4[%c0_4, %c0_5] : memref<32x96xbf16, #tpu.memory_space<vmem>>, vector<32x96xbf16>
    %cst = arith.constant dense<0.000000e+00> : vector<16x96xf32>
    %7 = tpu.matmul %5, %6, %cst {dimension_numbers = #tpu.dot_dimension_numbers<[1], [0], [0], [1], [0, 0, 1, 1], [], []>} : vector<16x32xbf16>, vector<32x96xbf16>, vector<16x96xf32> -> vector<16x96xf32>
    %8 = arith.truncf %7 : vector<16x96xf32> to vector<16x96xbf16>
    %9 = arith.addf %3, %8 : vector<16x96xbf16>
    %c0_6 = arith.constant 0 : index
    %c0_7 = arith.constant 0 : index
    %10 = vector.load %arg6[%c0_6, %c0_7] : memref<16x96xbf16, #tpu.memory_space<vmem>>, vector<16x96xbf16>
    tpu.vector_store %arg6[%c0_6, %c0_7], %9 {strides = array<i32>} : memref<16x96xbf16, #tpu.memory_space<vmem>>, vector<16x96xbf16>,
    return
  }
  func.func @transform_0(%arg0: i32, %arg1: i32, %arg2: i32) -> (i32, i32) {
    %c0_i32 = arith.constant 0 : i32
    return %arg0, %arg2 : i32, i32
  }
  func.func @transform_1(%arg0: i32, %arg1: i32, %arg2: i32) -> (i32, i32) {
    %c0_i32 = arith.constant 0 : i32
    return %arg2, %arg1 : i32, i32
  }
  func.func @transform_2(%arg0: i32, %arg1: i32, %arg2: i32) -> (i32, i32) {
    %c0_i32 = arith.constant 0 : i32
    %c0_i32_0 = arith.constant 0 : i32
    return %c0_i32, %arg1 : i32, i32
  }
  func.func @transform_3(%arg0: i32, %arg1: i32, %arg2: i32) -> (i32, i32) {
    %c0_i32 = arith.constant 0 : i32
    return %arg0, %arg1 : i32, i32
  }
}

module attributes {stable_mosaic.version = 11 : i64} {
  func.func @_linear_kernel(%arg0: i32, %arg1: i32, %arg2: i32, %arg3: memref<16x32xf32, #tpu.memory_space<vmem>>, %arg4: memref<32x32xbf16, #tpu.memory_space<vmem>>, %arg5: memref<1x32xf32, #tpu.memory_space<vmem>>, %arg6: memref<16x32xbf16, #tpu.memory_space<vmem>>) attributes {dimension_semantics = [#tpu.dimension_semantics<parallel>, #tpu.dimension_semantics<parallel>, #tpu.dimension_semantics<arbitrary>], iteration_bounds = array<i64: 1, 1, 1>, scalar_prefetch = 0 : i64, scratch_operands = 0 : i64, tpu.core_type = #tpu.core_type<tc>, window_params = [{transform_indices = @transform_0, window_bounds = array<i64: 16, 32>}, {transform_indices = @transform_1, window_bounds = array<i64: 32, 32>}, {transform_indices = @transform_2, window_bounds = array<i64: 1, 32>}, {transform_indices = @transform_3, window_bounds = array<i64: 16, 32>}]} {
    %c0_i32 = arith.constant 0 : i32
    %0 = arith.cmpi eq, %arg2, %c0_i32 : i32
    %1 = arith.extui %0 : i1 to i32
    %c0_i32_0 = arith.constant 0 : i32
    %2 = arith.cmpi ne, %1, %c0_i32_0 : i32
    scf.if %2 {
      %c0_8 = arith.constant 0 : index
      %c0_9 = arith.constant 0 : index
      %11 = vector.load %arg5[%c0_8, %c0_9] : memref<1x32xf32, #tpu.memory_space<vmem>>, vector<1x32xf32>
      %12 = arith.truncf %11 : vector<1x32xf32> to vector<1x32xbf16>
      %13 = vector.shape_cast %12 : vector<1x32xbf16> to vector<1x32xbf16>
      %14 = vector.broadcast %13 : vector<1x32xbf16> to vector<16x32xbf16>
      %c0_10 = arith.constant 0 : index
      %c0_11 = arith.constant 0 : index
      %15 = vector.load %arg6[%c0_10, %c0_11] : memref<16x32xbf16, #tpu.memory_space<vmem>>, vector<16x32xbf16>
      tpu.vector_store %arg6[%c0_10, %c0_11], %14 {strides = array<i32>} : memref<16x32xbf16, #tpu.memory_space<vmem>>, vector<16x32xbf16>,
    } else {
    }
    %c0 = arith.constant 0 : index
    %c0_1 = arith.constant 0 : index
    %3 = vector.load %arg6[%c0, %c0_1] : memref<16x32xbf16, #tpu.memory_space<vmem>>, vector<16x32xbf16>
    %c0_2 = arith.constant 0 : index
    %c0_3 = arith.constant 0 : index
    %4 = vector.load %arg3[%c0_2, %c0_3] : memref<16x32xf32, #tpu.memory_space<vmem>>, vector<16x32xf32>
    %5 = arith.truncf %4 : vector<16x32xf32> to vector<16x32xbf16>
    %c0_4 = arith.constant 0 : index
    %c0_5 = arith.constant 0 : index
    %6 = vector.load %arg4[%c0_4, %c0_5] : memref<32x32xbf16, #tpu.memory_space<vmem>>, vector<32x32xbf16>
    %cst = arith.constant dense<0.000000e+00> : vector<16x32xf32>
    %7 = tpu.matmul %5, %6, %cst {dimension_numbers = #tpu.dot_dimension_numbers<[1], [0], [0], [1], [0, 0, 1, 1], [], []>} : vector<16x32xbf16>, vector<32x32xbf16>, vector<16x32xf32> -> vector<16x32xf32>
    %8 = arith.truncf %7 : vector<16x32xf32> to vector<16x32xbf16>
    %9 = arith.addf %3, %8 : vector<16x32xbf16>
    %c0_6 = arith.constant 0 : index
    %c0_7 = arith.constant 0 : index
    %10 = vector.load %arg6[%c0_6, %c0_7] : memref<16x32xbf16, #tpu.memory_space<vmem>>, vector<16x32xbf16>
    tpu.vector_store %arg6[%c0_6, %c0_7], %9 {strides = array<i32>} : memref<16x32xbf16, #tpu.memory_space<vmem>>, vector<16x32xbf16>,
    return
  }
  func.func @transform_0(%arg0: i32, %arg1: i32, %arg2: i32) -> (i32, i32) {
    %c0_i32 = arith.constant 0 : i32
    return %arg0, %arg2 : i32, i32
  }
  func.func @transform_1(%arg0: i32, %arg1: i32, %arg2: i32) -> (i32, i32) {
    %c0_i32 = arith.constant 0 : i32
    return %arg2, %arg1 : i32, i32
  }
  func.func @transform_2(%arg0: i32, %arg1: i32, %arg2: i32) -> (i32, i32) {
    %c0_i32 = arith.constant 0 : i32
    %c0_i32_0 = arith.constant 0 : i32
    return %c0_i32, %arg1 : i32, i32
  }
  func.func @transform_3(%arg0: i32, %arg1: i32, %arg2: i32) -> (i32, i32) {
    %c0_i32 = arith.constant 0 : i32
    return %arg0, %arg1 : i32, i32
  }
}

module attributes {stable_mosaic.version = 11 : i64} {
  func.func @_flash_attn_kernel(%arg0: i32, %arg1: i32, %arg2: i32, %arg3: memref<1x8x8xbf16, #tpu.memory_space<vmem>>, %arg4: memref<1x8x8xbf16, #tpu.memory_space<vmem>>, %arg5: memref<1x8x8xbf16, #tpu.memory_space<vmem>>, %arg6: memref<1x8x8xbf16, #tpu.memory_space<vmem>>, %arg7: memref<8x1xf32, #tpu.memory_space<vmem>>, %arg8: memref<8x1xf32, #tpu.memory_space<vmem>>, %arg9: memref<8x8xf32, #tpu.memory_space<vmem>>) attributes {dimension_semantics = [#tpu.dimension_semantics<parallel>, #tpu.dimension_semantics<parallel>, #tpu.dimension_semantics<arbitrary>], iteration_bounds = array<i64: 8, 1, 1>, scalar_prefetch = 0 : i64, scratch_operands = 3 : i64, tpu.core_type = #tpu.core_type<tc>, window_params = [{transform_indices = @transform_0, window_bounds = array<i64: 1, 8, 8>}, {transform_indices = @transform_1, window_bounds = array<i64: 1, 8, 8>}, {transform_indices = @transform_2, window_bounds = array<i64: 1, 8, 8>}, {transform_indices = @transform_3, window_bounds = array<i64: 1, 8, 8>}]} {
    %c0_i32 = arith.constant 0 : i32
    %0 = arith.cmpi eq, %arg2, %c0_i32 : i32
    %1 = arith.extui %0 : i1 to i32
    %c0_i32_0 = arith.constant 0 : i32
    %2 = arith.cmpi ne, %1, %c0_i32_0 : i32
    scf.if %2 {
      %cst_27 = arith.constant 0xFF800000 : f32
      %38 = vector.broadcast %cst_27 : f32 to vector<8x1xf32>
      %c0_28 = arith.constant 0 : index
      %c0_29 = arith.constant 0 : index
      %39 = vector.load %arg7[%c0_28, %c0_29] : memref<8x1xf32, #tpu.memory_space<vmem>>, vector<8x1xf32>
      tpu.vector_store %arg7[%c0_28, %c0_29], %38 {strides = array<i32>} : memref<8x1xf32, #tpu.memory_space<vmem>>, vector<8x1xf32>,
      %cst_30 = arith.constant 0.000000e+00 : f32
      %40 = vector.broadcast %cst_30 : f32 to vector<8x1xf32>
      %c0_31 = arith.constant 0 : index
      %c0_32 = arith.constant 0 : index
      %41 = vector.load %arg8[%c0_31, %c0_32] : memref<8x1xf32, #tpu.memory_space<vmem>>, vector<8x1xf32>
      tpu.vector_store %arg8[%c0_31, %c0_32], %40 {strides = array<i32>} : memref<8x1xf32, #tpu.memory_space<vmem>>, vector<8x1xf32>,
      %cst_33 = arith.constant 0.000000e+00 : f32
      %42 = vector.broadcast %cst_33 : f32 to vector<8x8xf32>
      %c0_34 = arith.constant 0 : index
      %c0_35 = arith.constant 0 : index
      %43 = vector.load %arg9[%c0_34, %c0_35] : memref<8x8xf32, #tpu.memory_space<vmem>>, vector<8x8xf32>
      tpu.vector_store %arg9[%c0_34, %c0_35], %42 {strides = array<i32>} : memref<8x8xf32, #tpu.memory_space<vmem>>, vector<8x8xf32>,
    } else {
    }
    %c0 = arith.constant 0 : index
    %c0_1 = arith.constant 0 : index
    %c0_2 = arith.constant 0 : index
    %3 = vector.load %arg3[%c0, %c0_1, %c0_2] : memref<1x8x8xbf16, #tpu.memory_space<vmem>>, vector<1x8x8xbf16>
    %4 = vector.shape_cast %3 : vector<1x8x8xbf16> to vector<8x8xbf16>
    %cst = arith.constant 3.535160e-01 : bf16
    %5 = vector.broadcast %cst : bf16 to vector<8x8xbf16>
    %6 = arith.mulf %4, %5 : vector<8x8xbf16>
    %c0_3 = arith.constant 0 : index
    %c0_4 = arith.constant 0 : index
    %c0_5 = arith.constant 0 : index
    %7 = vector.load %arg4[%c0_3, %c0_4, %c0_5] : memref<1x8x8xbf16, #tpu.memory_space<vmem>>, vector<1x8x8xbf16>
    %8 = vector.shape_cast %7 : vector<1x8x8xbf16> to vector<8x8xbf16>
    %cst_6 = arith.constant dense<0.000000e+00> : vector<8x8xf32>
    %9 = tpu.matmul %6, %8, %cst_6 {dimension_numbers = #tpu.dot_dimension_numbers<[1], [1], [0], [0], [0, 0, 1, 0], [], []>} : vector<8x8xbf16>, vector<8x8xbf16>, vector<8x8xf32> -> vector<8x8xf32>
    %c0_7 = arith.constant 0 : index
    %c0_8 = arith.constant 0 : index
    %10 = vector.load %arg7[%c0_7, %c0_8] : memref<8x1xf32, #tpu.memory_space<vmem>>, vector<8x1xf32>
    %cst_9 = arith.constant dense<0xFF800000> : vector<8xf32>
    %11 = vector.multi_reduction <maximumf>, %9, %cst_9 [1] : vector<8x8xf32> to vector<8xf32>
    %12 = vector.shape_cast %11 : vector<8xf32> to vector<8x1xf32>
    %13 = arith.maximumf %10, %12 : vector<8x1xf32>
    %14 = arith.subf %10, %13 : vector<8x1xf32>
    %15 = math.exp %14 : vector<8x1xf32>
    %16 = vector.broadcast %13 : vector<8x1xf32> to vector<8x8xf32>
    %17 = arith.subf %9, %16 : vector<8x8xf32>
    %18 = math.exp %17 : vector<8x8xf32>
    %c0_10 = arith.constant 0 : index
    %c0_11 = arith.constant 0 : index
    %19 = vector.load %arg8[%c0_10, %c0_11] : memref<8x1xf32, #tpu.memory_space<vmem>>, vector<8x1xf32>
    %20 = arith.mulf %15, %19 : vector<8x1xf32>
    %cst_12 = arith.constant dense<0.000000e+00> : vector<8xf32>
    %21 = vector.multi_reduction <add>, %18, %cst_12 [1] : vector<8x8xf32> to vector<8xf32>
    %22 = vector.shape_cast %21 : vector<8xf32> to vector<8x1xf32>
    %23 = arith.addf %20, %22 : vector<8x1xf32>
    %c0_13 = arith.constant 0 : index
    %c0_14 = arith.constant 0 : index
    %24 = vector.load %arg8[%c0_13, %c0_14] : memref<8x1xf32, #tpu.memory_space<vmem>>, vector<8x1xf32>
    tpu.vector_store %arg8[%c0_13, %c0_14], %23 {strides = array<i32>} : memref<8x1xf32, #tpu.memory_space<vmem>>, vector<8x1xf32>,
    %c0_15 = arith.constant 0 : index
    %c0_16 = arith.constant 0 : index
    %25 = vector.load %arg9[%c0_15, %c0_16] : memref<8x8xf32, #tpu.memory_space<vmem>>, vector<8x8xf32>
    %26 = vector.broadcast %15 : vector<8x1xf32> to vector<8x8xf32>
    %27 = arith.mulf %26, %25 : vector<8x8xf32>
    %28 = arith.truncf %18 : vector<8x8xf32> to vector<8x8xbf16>
    %c0_17 = arith.constant 0 : index
    %c0_18 = arith.constant 0 : index
    %c0_19 = arith.constant 0 : index
    %29 = vector.load %arg5[%c0_17, %c0_18, %c0_19] : memref<1x8x8xbf16, #tpu.memory_space<vmem>>, vector<1x8x8xbf16>
    %30 = vector.shape_cast %29 : vector<1x8x8xbf16> to vector<8x8xbf16>
    %cst_20 = arith.constant dense<0.000000e+00> : vector<8x8xf32>
    %31 = tpu.matmul %28, %30, %cst_20 {dimension_numbers = #tpu.dot_dimension_numbers<[1], [0], [0], [1], [0, 0, 1, 1], [], []>} : vector<8x8xbf16>, vector<8x8xbf16>, vector<8x8xf32> -> vector<8x8xf32>
    %32 = arith.addf %27, %31 : vector<8x8xf32>
    %c0_21 = arith.constant 0 : index
    %c0_22 = arith.constant 0 : index
    %33 = vector.load %arg9[%c0_21, %c0_22] : memref<8x8xf32, #tpu.memory_space<vmem>>, vector<8x8xf32>
    tpu.vector_store %arg9[%c0_21, %c0_22], %32 {strides = array<i32>} : memref<8x8xf32, #tpu.memory_space<vmem>>, vector<8x8xf32>,
    %c0_23 = arith.constant 0 : index
    %c0_24 = arith.constant 0 : index
    %34 = vector.load %arg7[%c0_23, %c0_24] : memref<8x1xf32, #tpu.memory_space<vmem>>, vector<8x1xf32>
    tpu.vector_store %arg7[%c0_23, %c0_24], %13 {strides = array<i32>} : memref<8x1xf32, #tpu.memory_space<vmem>>, vector<8x1xf32>,
    %c0_i32_25 = arith.constant 0 : i32
    %35 = arith.cmpi eq, %arg2, %c0_i32_25 : i32
    %36 = arith.extui %35 : i1 to i32
    %c0_i32_26 = arith.constant 0 : i32
    %37 = arith.cmpi ne, %36, %c0_i32_26 : i32
    scf.if %37 {
      %c0_27 = arith.constant 0 : index
      %c0_28 = arith.constant 0 : index
      %38 = vector.load %arg9[%c0_27, %c0_28] : memref<8x8xf32, #tpu.memory_space<vmem>>, vector<8x8xf32>
      %c0_29 = arith.constant 0 : index
      %c0_30 = arith.constant 0 : index
      %39 = vector.load %arg8[%c0_29, %c0_30] : memref<8x1xf32, #tpu.memory_space<vmem>>, vector<8x1xf32>
      %40 = tpu.reciprocal %39 {approx = true} : vector<8x1xf32> -> vector<8x1xf32>
      %41 = vector.broadcast %40 : vector<8x1xf32> to vector<8x8xf32>
      %42 = arith.mulf %38, %41 : vector<8x8xf32>
      %43 = arith.truncf %42 : vector<8x8xf32> to vector<8x8xbf16>
      %c0_31 = arith.constant 0 : index
      %c0_32 = arith.constant 0 : index
      %c0_33 = arith.constant 0 : index
      %44 = vector.load %arg6[%c0_31, %c0_32, %c0_33] : memref<1x8x8xbf16, #tpu.memory_space<vmem>>, vector<1x8x8xbf16>
      %45 = vector.shape_cast %44 : vector<1x8x8xbf16> to vector<8x8xbf16>
      %46 = vector.shape_cast %43 : vector<8x8xbf16> to vector<1x8x8xbf16>
      tpu.vector_store %arg6[%c0_31, %c0_32, %c0_33], %46 {strides = array<i32>} : memref<1x8x8xbf16, #tpu.memory_space<vmem>>, vector<1x8x8xbf16>,
    } else {
    }
    return
  }
  func.func @transform_0(%arg0: i32, %arg1: i32, %arg2: i32) -> (i32, i32, i32) {
    %c0_i32 = arith.constant 0 : i32
    %c0_i32_0 = arith.constant 0 : i32
    return %arg0, %arg1, %c0_i32 : i32, i32, i32
  }
  func.func @transform_1(%arg0: i32, %arg1: i32, %arg2: i32) -> (i32, i32, i32) {
    %c0_i32 = arith.constant 0 : i32
    %c0_i32_0 = arith.constant 0 : i32
    return %arg0, %arg2, %c0_i32 : i32, i32, i32
  }
  func.func @transform_2(%arg0: i32, %arg1: i32, %arg2: i32) -> (i32, i32, i32) {
    %c0_i32 = arith.constant 0 : i32
    %c0_i32_0 = arith.constant 0 : i32
    return %arg0, %arg2, %c0_i32 : i32, i32, i32
  }
  func.func @transform_3(%arg0: i32, %arg1: i32, %arg2: i32) -> (i32, i32, i32) {
    %c0_i32 = arith.constant 0 : i32
    %c0_i32_0 = arith.constant 0 : i32
    return %arg0, %arg1, %c0_i32 : i32, i32, i32
  }
}

module attributes {stable_mosaic.version = 11 : i64} {
  func.func @_matmul_res_ln_kernel(%arg0: i32, %arg1: i32, %arg2: memref<16x32xbf16, #tpu.memory_space<vmem>>, %arg3: memref<32x32xbf16, #tpu.memory_space<vmem>>, %arg4: memref<1x32xf32, #tpu.memory_space<vmem>>, %arg5: memref<16x32xf32, #tpu.memory_space<vmem>>, %arg6: memref<1x32xf32, #tpu.memory_space<vmem>>, %arg7: memref<1x32xf32, #tpu.memory_space<vmem>>, %arg8: memref<16x32xf32, #tpu.memory_space<vmem>>, %arg9: memref<16x32xf32, #tpu.memory_space<vmem>>) attributes {dimension_semantics = [#tpu.dimension_semantics<parallel>, #tpu.dimension_semantics<arbitrary>], iteration_bounds = array<i64: 1, 1>, scalar_prefetch = 0 : i64, scratch_operands = 1 : i64, tpu.core_type = #tpu.core_type<tc>, window_params = [{transform_indices = @transform_0, window_bounds = array<i64: 16, 32>}, {transform_indices = @transform_1, window_bounds = array<i64: 32, 32>}, {pipeline_mode = #tpu.pipeline_mode<synchronous>, transform_indices = @transform_2, window_bounds = array<i64: 1, 32>}, {transform_indices = @transform_3, window_bounds = array<i64: 16, 32>}, {pipeline_mode = #tpu.pipeline_mode<synchronous>, transform_indices = @transform_4, window_bounds = array<i64: 1, 32>}, {pipeline_mode = #tpu.pipeline_mode<synchronous>, transform_indices = @transform_5, window_bounds = array<i64: 1, 32>}, {transform_indices = @transform_6, window_bounds = array<i64: 16, 32>}]} {
    %c0_i32 = arith.constant 0 : i32
    %0 = arith.cmpi eq, %arg1, %c0_i32 : i32
    %1 = arith.extui %0 : i1 to i32
    %c0_i32_0 = arith.constant 0 : i32
    %2 = arith.cmpi ne, %1, %c0_i32_0 : i32
    scf.if %2 {
      %cst_10 = arith.constant 0.000000e+00 : f32
      %12 = vector.broadcast %cst_10 : f32 to vector<16x32xf32>
      %c0_11 = arith.constant 0 : index
      %c0_12 = arith.constant 0 : index
      %13 = vector.load %arg9[%c0_11, %c0_12] : memref<16x32xf32, #tpu.memory_space<vmem>>, vector<16x32xf32>
      tpu.vector_store %arg9[%c0_11, %c0_12], %12 {strides = array<i32>} : memref<16x32xf32, #tpu.memory_space<vmem>>, vector<16x32xf32>,
    } else {
    }
    %c0 = arith.constant 0 : index
    %c0_1 = arith.constant 0 : index
    %3 = vector.load %arg9[%c0, %c0_1] : memref<16x32xf32, #tpu.memory_space<vmem>>, vector<16x32xf32>
    %c0_2 = arith.constant 0 : index
    %c0_3 = arith.constant 0 : index
    %4 = vector.load %arg2[%c0_2, %c0_3] : memref<16x32xbf16, #tpu.memory_space<vmem>>, vector<16x32xbf16>
    %c0_4 = arith.constant 0 : index
    %c0_5 = arith.constant 0 : index
    %5 = vector.load %arg3[%c0_4, %c0_5] : memref<32x32xbf16, #tpu.memory_space<vmem>>, vector<32x32xbf16>
    %cst = arith.constant dense<0.000000e+00> : vector<16x32xf32>
    %6 = tpu.matmul %4, %5, %cst {dimension_numbers = #tpu.dot_dimension_numbers<[1], [0], [0], [1], [0, 0, 1, 1], [], []>} : vector<16x32xbf16>, vector<32x32xbf16>, vector<16x32xf32> -> vector<16x32xf32>
    %7 = arith.addf %3, %6 : vector<16x32xf32>
    %c0_6 = arith.constant 0 : index
    %c0_7 = arith.constant 0 : index
    %8 = vector.load %arg9[%c0_6, %c0_7] : memref<16x32xf32, #tpu.memory_space<vmem>>, vector<16x32xf32>
    tpu.vector_store %arg9[%c0_6, %c0_7], %7 {strides = array<i32>} : memref<16x32xf32, #tpu.memory_space<vmem>>, vector<16x32xf32>,
    %c0_i32_8 = arith.constant 0 : i32
    %9 = arith.cmpi eq, %arg1, %c0_i32_8 : i32
    %10 = arith.extui %9 : i1 to i32
    %c0_i32_9 = arith.constant 0 : i32
    %11 = arith.cmpi ne, %10, %c0_i32_9 : i32
    scf.if %11 {
      %c0_10 = arith.constant 0 : index
      %c0_11 = arith.constant 0 : index
      %12 = vector.load %arg9[%c0_10, %c0_11] : memref<16x32xf32, #tpu.memory_space<vmem>>, vector<16x32xf32>
      %c0_12 = arith.constant 0 : index
      %c0_13 = arith.constant 0 : index
      %13 = vector.load %arg4[%c0_12, %c0_13] : memref<1x32xf32, #tpu.memory_space<vmem>>, vector<1x32xf32>
      %14 = vector.broadcast %13 : vector<1x32xf32> to vector<16x32xf32>
      %15 = arith.addf %12, %14 : vector<16x32xf32>
      %c0_14 = arith.constant 0 : index
      %c0_15 = arith.constant 0 : index
      %16 = vector.load %arg5[%c0_14, %c0_15] : memref<16x32xf32, #tpu.memory_space<vmem>>, vector<16x32xf32>
      %17 = arith.addf %15, %16 : vector<16x32xf32>
      %cst_16 = arith.constant dense<0.000000e+00> : vector<16xf32>
      %18 = vector.multi_reduction <add>, %17, %cst_16 [1] : vector<16x32xf32> to vector<16xf32>
      %19 = vector.shape_cast %18 : vector<16xf32> to vector<16x1xf32>
      %cst_17 = arith.constant 3.200000e+01 : f32
      %20 = vector.broadcast %cst_17 : f32 to vector<16x1xf32>
      %21 = arith.divf %19, %20 : vector<16x1xf32>
      %22 = vector.broadcast %21 : vector<16x1xf32> to vector<16x32xf32>
      %23 = arith.subf %17, %22 : vector<16x32xf32>
      %24 = arith.mulf %23, %23 : vector<16x32xf32>
      %cst_18 = arith.constant dense<0.000000e+00> : vector<16xf32>
      %25 = vector.multi_reduction <add>, %24, %cst_18 [1] : vector<16x32xf32> to vector<16xf32>
      %26 = vector.shape_cast %25 : vector<16xf32> to vector<16x1xf32>
      %cst_19 = arith.constant 3.200000e+01 : f32
      %27 = vector.broadcast %cst_19 : f32 to vector<16x1xf32>
      %28 = arith.divf %26, %27 : vector<16x1xf32>
      %29 = vector.broadcast %21 : vector<16x1xf32> to vector<16x32xf32>
      %30 = arith.subf %17, %29 : vector<16x32xf32>
      %cst_20 = arith.constant 9.99999974E-6 : f32
      %31 = vector.broadcast %cst_20 : f32 to vector<16x1xf32>
      %32 = arith.addf %28, %31 : vector<16x1xf32>
      %33 = math.rsqrt %32 : vector<16x1xf32>
      %34 = vector.broadcast %33 : vector<16x1xf32> to vector<16x32xf32>
      %35 = arith.mulf %30, %34 : vector<16x32xf32>
      %c0_21 = arith.constant 0 : index
      %c0_22 = arith.constant 0 : index
      %36 = vector.load %arg6[%c0_21, %c0_22] : memref<1x32xf32, #tpu.memory_space<vmem>>, vector<1x32xf32>
      %37 = vector.broadcast %36 : vector<1x32xf32> to vector<16x32xf32>
      %38 = arith.mulf %35, %37 : vector<16x32xf32>
      %c0_23 = arith.constant 0 : index
      %c0_24 = arith.constant 0 : index
      %39 = vector.load %arg7[%c0_23, %c0_24] : memref<1x32xf32, #tpu.memory_space<vmem>>, vector<1x32xf32>
      %40 = vector.broadcast %39 : vector<1x32xf32> to vector<16x32xf32>
      %41 = arith.addf %38, %40 : vector<16x32xf32>
      %c0_25 = arith.constant 0 : index
      %c0_26 = arith.constant 0 : index
      %42 = vector.load %arg8[%c0_25, %c0_26] : memref<16x32xf32, #tpu.memory_space<vmem>>, vector<16x32xf32>
      tpu.vector_store %arg8[%c0_25, %c0_26], %41 {strides = array<i32>} : memref<16x32xf32, #tpu.memory_space<vmem>>, vector<16x32xf32>,
    } else {
    }
    return
  }
  func.func @transform_0(%arg0: i32, %arg1: i32) -> (i32, i32) {
    %c0_i32 = arith.constant 0 : i32
    return %arg0, %arg1 : i32, i32
  }
  func.func @transform_1(%arg0: i32, %arg1: i32) -> (i32, i32) {
    %c0_i32 = arith.constant 0 : i32
    %c0_i32_0 = arith.constant 0 : i32
    return %arg1, %c0_i32 : i32, i32
  }
  func.func @transform_2(%arg0: i32, %arg1: i32) -> (i32, i32) {
    %c0_i32 = arith.constant 0 : i32
    %c0_i32_0 = arith.constant 0 : i32
    %c0_i32_1 = arith.constant 0 : i32
    return %c0_i32, %c0_i32_0 : i32, i32
  }
  func.func @transform_3(%arg0: i32, %arg1: i32) -> (i32, i32) {
    %c0_i32 = arith.constant 0 : i32
    %c0_i32_0 = arith.constant 0 : i32
    return %arg0, %c0_i32 : i32, i32
  }
  func.func @transform_4(%arg0: i32, %arg1: i32) -> (i32, i32) {
    %c0_i32 = arith.constant 0 : i32
    %c0_i32_0 = arith.constant 0 : i32
    %c0_i32_1 = arith.constant 0 : i32
    return %c0_i32, %c0_i32_0 : i32, i32
  }
  func.func @transform_5(%arg0: i32, %arg1: i32) -> (i32, i32) {
    %c0_i32 = arith.constant 0 : i32
    %c0_i32_0 = arith.constant 0 : i32
    %c0_i32_1 = arith.constant 0 : i32
    return %c0_i32, %c0_i32_0 : i32, i32
  }
  func.func @transform_6(%arg0: i32, %arg1: i32) -> (i32, i32) {
    %c0_i32 = arith.constant 0 : i32
    %c0_i32_0 = arith.constant 0 : i32
    return %arg0, %c0_i32 : i32, i32
  }
}

module attributes {stable_mosaic.version = 11 : i64} {
  func.func @_matmul_res_ln_kernel(%arg0: i32, %arg1: i32, %arg2: memref<16x64xbf16, #tpu.memory_space<vmem>>, %arg3: memref<64x32xbf16, #tpu.memory_space<vmem>>, %arg4: memref<1x32xf32, #tpu.memory_space<vmem>>, %arg5: memref<16x32xf32, #tpu.memory_space<vmem>>, %arg6: memref<1x32xf32, #tpu.memory_space<vmem>>, %arg7: memref<1x32xf32, #tpu.memory_space<vmem>>, %arg8: memref<16x32xf32, #tpu.memory_space<vmem>>, %arg9: memref<16x32xf32, #tpu.memory_space<vmem>>) attributes {dimension_semantics = [#tpu.dimension_semantics<parallel>, #tpu.dimension_semantics<arbitrary>], iteration_bounds = array<i64: 1, 1>, scalar_prefetch = 0 : i64, scratch_operands = 1 : i64, tpu.core_type = #tpu.core_type<tc>, window_params = [{transform_indices = @transform_0, window_bounds = array<i64: 16, 64>}, {transform_indices = @transform_1, window_bounds = array<i64: 64, 32>}, {pipeline_mode = #tpu.pipeline_mode<synchronous>, transform_indices = @transform_2, window_bounds = array<i64: 1, 32>}, {transform_indices = @transform_3, window_bounds = array<i64: 16, 32>}, {pipeline_mode = #tpu.pipeline_mode<synchronous>, transform_indices = @transform_4, window_bounds = array<i64: 1, 32>}, {pipeline_mode = #tpu.pipeline_mode<synchronous>, transform_indices = @transform_5, window_bounds = array<i64: 1, 32>}, {transform_indices = @transform_6, window_bounds = array<i64: 16, 32>}]} {
    %c0_i32 = arith.constant 0 : i32
    %0 = arith.cmpi eq, %arg1, %c0_i32 : i32
    %1 = arith.extui %0 : i1 to i32
    %c0_i32_0 = arith.constant 0 : i32
    %2 = arith.cmpi ne, %1, %c0_i32_0 : i32
    scf.if %2 {
      %cst_10 = arith.constant 0.000000e+00 : f32
      %12 = vector.broadcast %cst_10 : f32 to vector<16x32xf32>
      %c0_11 = arith.constant 0 : index
      %c0_12 = arith.constant 0 : index
      %13 = vector.load %arg9[%c0_11, %c0_12] : memref<16x32xf32, #tpu.memory_space<vmem>>, vector<16x32xf32>
      tpu.vector_store %arg9[%c0_11, %c0_12], %12 {strides = array<i32>} : memref<16x32xf32, #tpu.memory_space<vmem>>, vector<16x32xf32>,
    } else {
    }
    %c0 = arith.constant 0 : index
    %c0_1 = arith.constant 0 : index
    %3 = vector.load %arg9[%c0, %c0_1] : memref<16x32xf32, #tpu.memory_space<vmem>>, vector<16x32xf32>
    %c0_2 = arith.constant 0 : index
    %c0_3 = arith.constant 0 : index
    %4 = vector.load %arg2[%c0_2, %c0_3] : memref<16x64xbf16, #tpu.memory_space<vmem>>, vector<16x64xbf16>
    %c0_4 = arith.constant 0 : index
    %c0_5 = arith.constant 0 : index
    %5 = vector.load %arg3[%c0_4, %c0_5] : memref<64x32xbf16, #tpu.memory_space<vmem>>, vector<64x32xbf16>
    %cst = arith.constant dense<0.000000e+00> : vector<16x32xf32>
    %6 = tpu.matmul %4, %5, %cst {dimension_numbers = #tpu.dot_dimension_numbers<[1], [0], [0], [1], [0, 0, 1, 1], [], []>} : vector<16x64xbf16>, vector<64x32xbf16>, vector<16x32xf32> -> vector<16x32xf32>
    %7 = arith.addf %3, %6 : vector<16x32xf32>
    %c0_6 = arith.constant 0 : index
    %c0_7 = arith.constant 0 : index
    %8 = vector.load %arg9[%c0_6, %c0_7] : memref<16x32xf32, #tpu.memory_space<vmem>>, vector<16x32xf32>
    tpu.vector_store %arg9[%c0_6, %c0_7], %7 {strides = array<i32>} : memref<16x32xf32, #tpu.memory_space<vmem>>, vector<16x32xf32>,
    %c0_i32_8 = arith.constant 0 : i32
    %9 = arith.cmpi eq, %arg1, %c0_i32_8 : i32
    %10 = arith.extui %9 : i1 to i32
    %c0_i32_9 = arith.constant 0 : i32
    %11 = arith.cmpi ne, %10, %c0_i32_9 : i32
    scf.if %11 {
      %c0_10 = arith.constant 0 : index
      %c0_11 = arith.constant 0 : index
      %12 = vector.load %arg9[%c0_10, %c0_11] : memref<16x32xf32, #tpu.memory_space<vmem>>, vector<16x32xf32>
      %c0_12 = arith.constant 0 : index
      %c0_13 = arith.constant 0 : index
      %13 = vector.load %arg4[%c0_12, %c0_13] : memref<1x32xf32, #tpu.memory_space<vmem>>, vector<1x32xf32>
      %14 = vector.broadcast %13 : vector<1x32xf32> to vector<16x32xf32>
      %15 = arith.addf %12, %14 : vector<16x32xf32>
      %c0_14 = arith.constant 0 : index
      %c0_15 = arith.constant 0 : index
      %16 = vector.load %arg5[%c0_14, %c0_15] : memref<16x32xf32, #tpu.memory_space<vmem>>, vector<16x32xf32>
      %17 = arith.addf %15, %16 : vector<16x32xf32>
      %cst_16 = arith.constant dense<0.000000e+00> : vector<16xf32>
      %18 = vector.multi_reduction <add>, %17, %cst_16 [1] : vector<16x32xf32> to vector<16xf32>
      %19 = vector.shape_cast %18 : vector<16xf32> to vector<16x1xf32>
      %cst_17 = arith.constant 3.200000e+01 : f32
      %20 = vector.broadcast %cst_17 : f32 to vector<16x1xf32>
      %21 = arith.divf %19, %20 : vector<16x1xf32>
      %22 = vector.broadcast %21 : vector<16x1xf32> to vector<16x32xf32>
      %23 = arith.subf %17, %22 : vector<16x32xf32>
      %24 = arith.mulf %23, %23 : vector<16x32xf32>
      %cst_18 = arith.constant dense<0.000000e+00> : vector<16xf32>
      %25 = vector.multi_reduction <add>, %24, %cst_18 [1] : vector<16x32xf32> to vector<16xf32>
      %26 = vector.shape_cast %25 : vector<16xf32> to vector<16x1xf32>
      %cst_19 = arith.constant 3.200000e+01 : f32
      %27 = vector.broadcast %cst_19 : f32 to vector<16x1xf32>
      %28 = arith.divf %26, %27 : vector<16x1xf32>
      %29 = vector.broadcast %21 : vector<16x1xf32> to vector<16x32xf32>
      %30 = arith.subf %17, %29 : vector<16x32xf32>
      %cst_20 = arith.constant 9.99999974E-6 : f32
      %31 = vector.broadcast %cst_20 : f32 to vector<16x1xf32>
      %32 = arith.addf %28, %31 : vector<16x1xf32>
      %33 = math.rsqrt %32 : vector<16x1xf32>
      %34 = vector.broadcast %33 : vector<16x1xf32> to vector<16x32xf32>
      %35 = arith.mulf %30, %34 : vector<16x32xf32>
      %c0_21 = arith.constant 0 : index
      %c0_22 = arith.constant 0 : index
      %36 = vector.load %arg6[%c0_21, %c0_22] : memref<1x32xf32, #tpu.memory_space<vmem>>, vector<1x32xf32>
      %37 = vector.broadcast %36 : vector<1x32xf32> to vector<16x32xf32>
      %38 = arith.mulf %35, %37 : vector<16x32xf32>
      %c0_23 = arith.constant 0 : index
      %c0_24 = arith.constant 0 : index
      %39 = vector.load %arg7[%c0_23, %c0_24] : memref<1x32xf32, #tpu.memory_space<vmem>>, vector<1x32xf32>
      %40 = vector.broadcast %39 : vector<1x32xf32> to vector<16x32xf32>
      %41 = arith.addf %38, %40 : vector<16x32xf32>
      %c0_25 = arith.constant 0 : index
      %c0_26 = arith.constant 0 : index
      %42 = vector.load %arg8[%c0_25, %c0_26] : memref<16x32xf32, #tpu.memory_space<vmem>>, vector<16x32xf32>
      tpu.vector_store %arg8[%c0_25, %c0_26], %41 {strides = array<i32>} : memref<16x32xf32, #tpu.memory_space<vmem>>, vector<16x32xf32>,
    } else {
    }
    return
  }
  func.func @transform_0(%arg0: i32, %arg1: i32) -> (i32, i32) {
    %c0_i32 = arith.constant 0 : i32
    return %arg0, %arg1 : i32, i32
  }
  func.func @transform_1(%arg0: i32, %arg1: i32) -> (i32, i32) {
    %c0_i32 = arith.constant 0 : i32
    %c0_i32_0 = arith.constant 0 : i32
    return %arg1, %c0_i32 : i32, i32
  }
  func.func @transform_2(%arg0: i32, %arg1: i32) -> (i32, i32) {
    %c0_i32 = arith.constant 0 : i32
    %c0_i32_0 = arith.constant 0 : i32
    %c0_i32_1 = arith.constant 0 : i32
    return %c0_i32, %c0_i32_0 : i32, i32
  }
  func.func @transform_3(%arg0: i32, %arg1: i32) -> (i32, i32) {
    %c0_i32 = arith.constant 0 : i32
    %c0_i32_0 = arith.constant 0 : i32
    return %arg0, %c0_i32 : i32, i32
  }
  func.func @transform_4(%arg0: i32, %arg1: i32) -> (i32, i32) {
    %c0_i32 = arith.constant 0 : i32
    %c0_i32_0 = arith.constant 0 : i32
    %c0_i32_1 = arith.constant 0 : i32
    return %c0_i32, %c0_i32_0 : i32, i32
  }
  func.func @transform_5(%arg0: i32, %arg1: i32) -> (i32, i32) {
    %c0_i32 = arith.constant 0 : i32
    %c0_i32_0 = arith.constant 0 : i32
    %c0_i32_1 = arith.constant 0 : i32
    return %c0_i32, %c0_i32_0 : i32, i32
  }
  func.func @transform_6(%arg0: i32, %arg1: i32) -> (i32, i32) {
    %c0_i32 = arith.constant 0 : i32
    %c0_i32_0 = arith.constant 0 : i32
    return %arg0, %c0_i32 : i32, i32
  }
}

module attributes {stable_mosaic.version = 11 : i64} {
  func.func @_linear_kernel(%arg0: i32, %arg1: i32, %arg2: i32, %arg3: memref<16x32xf32, #tpu.memory_space<vmem>>, %arg4: memref<32x64xbf16, #tpu.memory_space<vmem>>, %arg5: memref<1x64xf32, #tpu.memory_space<vmem>>, %arg6: memref<16x64xbf16, #tpu.memory_space<vmem>>) attributes {dimension_semantics = [#tpu.dimension_semantics<parallel>, #tpu.dimension_semantics<parallel>, #tpu.dimension_semantics<arbitrary>], iteration_bounds = array<i64: 1, 1, 1>, scalar_prefetch = 0 : i64, scratch_operands = 0 : i64, tpu.core_type = #tpu.core_type<tc>, window_params = [{transform_indices = @transform_0, window_bounds = array<i64: 16, 32>}, {transform_indices = @transform_1, window_bounds = array<i64: 32, 64>}, {transform_indices = @transform_2, window_bounds = array<i64: 1, 64>}, {transform_indices = @transform_3, window_bounds = array<i64: 16, 64>}]} {
    %c0_i32 = arith.constant 0 : i32
    %0 = arith.cmpi eq, %arg2, %c0_i32 : i32
    %1 = arith.extui %0 : i1 to i32
    %c0_i32_0 = arith.constant 0 : i32
    %2 = arith.cmpi ne, %1, %c0_i32_0 : i32
    scf.if %2 {
      %c0_8 = arith.constant 0 : index
      %c0_9 = arith.constant 0 : index
      %11 = vector.load %arg5[%c0_8, %c0_9] : memref<1x64xf32, #tpu.memory_space<vmem>>, vector<1x64xf32>
      %12 = arith.truncf %11 : vector<1x64xf32> to vector<1x64xbf16>
      %13 = vector.shape_cast %12 : vector<1x64xbf16> to vector<1x64xbf16>
      %14 = vector.broadcast %13 : vector<1x64xbf16> to vector<16x64xbf16>
      %c0_10 = arith.constant 0 : index
      %c0_11 = arith.constant 0 : index
      %15 = vector.load %arg6[%c0_10, %c0_11] : memref<16x64xbf16, #tpu.memory_space<vmem>>, vector<16x64xbf16>
      tpu.vector_store %arg6[%c0_10, %c0_11], %14 {strides = array<i32>} : memref<16x64xbf16, #tpu.memory_space<vmem>>, vector<16x64xbf16>,
    } else {
    }
    %c0 = arith.constant 0 : index
    %c0_1 = arith.constant 0 : index
    %3 = vector.load %arg6[%c0, %c0_1] : memref<16x64xbf16, #tpu.memory_space<vmem>>, vector<16x64xbf16>
    %c0_2 = arith.constant 0 : index
    %c0_3 = arith.constant 0 : index
    %4 = vector.load %arg3[%c0_2, %c0_3] : memref<16x32xf32, #tpu.memory_space<vmem>>, vector<16x32xf32>
    %5 = arith.truncf %4 : vector<16x32xf32> to vector<16x32xbf16>
    %c0_4 = arith.constant 0 : index
    %c0_5 = arith.constant 0 : index
    %6 = vector.load %arg4[%c0_4, %c0_5] : memref<32x64xbf16, #tpu.memory_space<vmem>>, vector<32x64xbf16>
    %cst = arith.constant dense<0.000000e+00> : vector<16x64xf32>
    %7 = tpu.matmul %5, %6, %cst {dimension_numbers = #tpu.dot_dimension_numbers<[1], [0], [0], [1], [0, 0, 1, 1], [], []>} : vector<16x32xbf16>, vector<32x64xbf16>, vector<16x64xf32> -> vector<16x64xf32>
    %8 = arith.truncf %7 : vector<16x64xf32> to vector<16x64xbf16>
    %9 = arith.addf %3, %8 : vector<16x64xbf16>
    %c0_6 = arith.constant 0 : index
    %c0_7 = arith.constant 0 : index
    %10 = vector.load %arg6[%c0_6, %c0_7] : memref<16x64xbf16, #tpu.memory_space<vmem>>, vector<16x64xbf16>
    tpu.vector_store %arg6[%c0_6, %c0_7], %9 {strides = array<i32>} : memref<16x64xbf16, #tpu.memory_space<vmem>>, vector<16x64xbf16>,
    return
  }
  func.func @transform_0(%arg0: i32, %arg1: i32, %arg2: i32) -> (i32, i32) {
    %c0_i32 = arith.constant 0 : i32
    return %arg0, %arg2 : i32, i32
  }
  func.func @transform_1(%arg0: i32, %arg1: i32, %arg2: i32) -> (i32, i32) {
    %c0_i32 = arith.constant 0 : i32
    return %arg2, %arg1 : i32, i32
  }
  func.func @transform_2(%arg0: i32, %arg1: i32, %arg2: i32) -> (i32, i32) {
    %c0_i32 = arith.constant 0 : i32
    %c0_i32_0 = arith.constant 0 : i32
    return %c0_i32, %arg1 : i32, i32
  }
  func.func @transform_3(%arg0: i32, %arg1: i32, %arg2: i32) -> (i32, i32) {
    %c0_i32 = arith.constant 0 : i32
    return %arg0, %arg1 : i32, i32
  }
}

module attributes {stable_mosaic.version = 11 : i64} {
  func.func @_linear_kernel(%arg0: i32, %arg1: i32, %arg2: i32, %arg3: memref<16x32xf32, #tpu.memory_space<vmem>>, %arg4: memref<32x128xbf16, #tpu.memory_space<vmem>>, %arg5: memref<1x128xf32, #tpu.memory_space<vmem>>, %arg6: memref<16x128xf32, #tpu.memory_space<vmem>>) attributes {dimension_semantics = [#tpu.dimension_semantics<parallel>, #tpu.dimension_semantics<parallel>, #tpu.dimension_semantics<arbitrary>], iteration_bounds = array<i64: 1, 1, 1>, scalar_prefetch = 0 : i64, scratch_operands = 0 : i64, tpu.core_type = #tpu.core_type<tc>, window_params = [{transform_indices = @transform_0, window_bounds = array<i64: 16, 32>}, {transform_indices = @transform_1, window_bounds = array<i64: 32, 128>}, {transform_indices = @transform_2, window_bounds = array<i64: 1, 128>}, {transform_indices = @transform_3, window_bounds = array<i64: 16, 128>}]} {
    %c0_i32 = arith.constant 0 : i32
    %0 = arith.cmpi eq, %arg2, %c0_i32 : i32
    %1 = arith.extui %0 : i1 to i32
    %c0_i32_0 = arith.constant 0 : i32
    %2 = arith.cmpi ne, %1, %c0_i32_0 : i32
    scf.if %2 {
      %c0_8 = arith.constant 0 : index
      %c0_9 = arith.constant 0 : index
      %10 = vector.load %arg5[%c0_8, %c0_9] : memref<1x128xf32, #tpu.memory_space<vmem>>, vector<1x128xf32>
      %11 = vector.shape_cast %10 : vector<1x128xf32> to vector<1x128xf32>
      %12 = vector.broadcast %11 : vector<1x128xf32> to vector<16x128xf32>
      %c0_10 = arith.constant 0 : index
      %c0_11 = arith.constant 0 : index
      %13 = vector.load %arg6[%c0_10, %c0_11] : memref<16x128xf32, #tpu.memory_space<vmem>>, vector<16x128xf32>
      tpu.vector_store %arg6[%c0_10, %c0_11], %12 {strides = array<i32>} : memref<16x128xf32, #tpu.memory_space<vmem>>, vector<16x128xf32>,
    } else {
    }
    %c0 = arith.constant 0 : index
    %c0_1 = arith.constant 0 : index
    %3 = vector.load %arg6[%c0, %c0_1] : memref<16x128xf32, #tpu.memory_space<vmem>>, vector<16x128xf32>
    %c0_2 = arith.constant 0 : index
    %c0_3 = arith.constant 0 : index
    %4 = vector.load %arg3[%c0_2, %c0_3] : memref<16x32xf32, #tpu.memory_space<vmem>>, vector<16x32xf32>
    %5 = arith.truncf %4 : vector<16x32xf32> to vector<16x32xbf16>
    %c0_4 = arith.constant 0 : index
    %c0_5 = arith.constant 0 : index
    %6 = vector.load %arg4[%c0_4, %c0_5] : memref<32x128xbf16, #tpu.memory_space<vmem>>, vector<32x128xbf16>
    %cst = arith.constant dense<0.000000e+00> : vector<16x128xf32>
    %7 = tpu.matmul %5, %6, %cst {dimension_numbers = #tpu.dot_dimension_numbers<[1], [0], [0], [1], [0, 0, 1, 1], [], []>} : vector<16x32xbf16>, vector<32x128xbf16>, vector<16x128xf32> -> vector<16x128xf32>
    %8 = arith.addf %3, %7 : vector<16x128xf32>
    %c0_6 = arith.constant 0 : index
    %c0_7 = arith.constant 0 : index
    %9 = vector.load %arg6[%c0_6, %c0_7] : memref<16x128xf32, #tpu.memory_space<vmem>>, vector<16x128xf32>
    tpu.vector_store %arg6[%c0_6, %c0_7], %8 {strides = array<i32>} : memref<16x128xf32, #tpu.memory_space<vmem>>, vector<16x128xf32>,
    return
  }
  func.func @transform_0(%arg0: i32, %arg1: i32, %arg2: i32) -> (i32, i32) {
    %c0_i32 = arith.constant 0 : i32
    return %arg0, %arg2 : i32, i32
  }
  func.func @transform_1(%arg0: i32, %arg1: i32, %arg2: i32) -> (i32, i32) {
    %c0_i32 = arith.constant 0 : i32
    return %arg2, %arg1 : i32, i32
  }
  func.func @transform_2(%arg0: i32, %arg1: i32, %arg2: i32) -> (i32, i32) {
    %c0_i32 = arith.constant 0 : i32
    %c0_i32_0 = arith.constant 0 : i32
    return %c0_i32, %arg1 : i32, i32
  }
  func.func @transform_3(%arg0: i32, %arg1: i32, %arg2: i32) -> (i32, i32) {
    %c0_i32 = arith.constant 0 : i32
    return %arg0, %arg1 : i32, i32
  }
}

module attributes {stable_mosaic.version = 11 : i64} {
  func.func @_linear_kernel(%arg0: i32, %arg1: i32, %arg2: i32, %arg3: memref<16x32xf32, #tpu.memory_space<vmem>>, %arg4: memref<32x64xbf16, #tpu.memory_space<vmem>>, %arg5: memref<1x64xf32, #tpu.memory_space<vmem>>, %arg6: memref<16x64xbf16, #tpu.memory_space<vmem>>) attributes {dimension_semantics = [#tpu.dimension_semantics<parallel>, #tpu.dimension_semantics<parallel>, #tpu.dimension_semantics<arbitrary>], iteration_bounds = array<i64: 1, 1, 1>, scalar_prefetch = 0 : i64, scratch_operands = 0 : i64, tpu.core_type = #tpu.core_type<tc>, window_params = [{transform_indices = @transform_0, window_bounds = array<i64: 16, 32>}, {transform_indices = @transform_1, window_bounds = array<i64: 32, 64>}, {transform_indices = @transform_2, window_bounds = array<i64: 1, 64>}, {transform_indices = @transform_3, window_bounds = array<i64: 16, 64>}]} {
    %c0_i32 = arith.constant 0 : i32
    %0 = arith.cmpi eq, %arg2, %c0_i32 : i32
    %1 = arith.extui %0 : i1 to i32
    %c0_i32_0 = arith.constant 0 : i32
    %2 = arith.cmpi ne, %1, %c0_i32_0 : i32
    scf.if %2 {
      %c0_10 = arith.constant 0 : index
      %c0_11 = arith.constant 0 : index
      %14 = vector.load %arg5[%c0_10, %c0_11] : memref<1x64xf32, #tpu.memory_space<vmem>>, vector<1x64xf32>
      %15 = arith.truncf %14 : vector<1x64xf32> to vector<1x64xbf16>
      %16 = vector.shape_cast %15 : vector<1x64xbf16> to vector<1x64xbf16>
      %17 = vector.broadcast %16 : vector<1x64xbf16> to vector<16x64xbf16>
      %c0_12 = arith.constant 0 : index
      %c0_13 = arith.constant 0 : index
      %18 = vector.load %arg6[%c0_12, %c0_13] : memref<16x64xbf16, #tpu.memory_space<vmem>>, vector<16x64xbf16>
      tpu.vector_store %arg6[%c0_12, %c0_13], %17 {strides = array<i32>} : memref<16x64xbf16, #tpu.memory_space<vmem>>, vector<16x64xbf16>,
    } else {
    }
    %c0 = arith.constant 0 : index
    %c0_1 = arith.constant 0 : index
    %3 = vector.load %arg6[%c0, %c0_1] : memref<16x64xbf16, #tpu.memory_space<vmem>>, vector<16x64xbf16>
    %c0_2 = arith.constant 0 : index
    %c0_3 = arith.constant 0 : index
    %4 = vector.load %arg3[%c0_2, %c0_3] : memref<16x32xf32, #tpu.memory_space<vmem>>, vector<16x32xf32>
    %5 = arith.truncf %4 : vector<16x32xf32> to vector<16x32xbf16>
    %c0_4 = arith.constant 0 : index
    %c0_5 = arith.constant 0 : index
    %6 = vector.load %arg4[%c0_4, %c0_5] : memref<32x64xbf16, #tpu.memory_space<vmem>>, vector<32x64xbf16>
    %cst = arith.constant dense<0.000000e+00> : vector<16x64xf32>
    %7 = tpu.matmul %5, %6, %cst {dimension_numbers = #tpu.dot_dimension_numbers<[1], [0], [0], [1], [0, 0, 1, 1], [], []>} : vector<16x32xbf16>, vector<32x64xbf16>, vector<16x64xf32> -> vector<16x64xf32>
    %8 = arith.truncf %7 : vector<16x64xf32> to vector<16x64xbf16>
    %9 = arith.addf %3, %8 : vector<16x64xbf16>
    %c0_6 = arith.constant 0 : index
    %c0_7 = arith.constant 0 : index
    %10 = vector.load %arg6[%c0_6, %c0_7] : memref<16x64xbf16, #tpu.memory_space<vmem>>, vector<16x64xbf16>
    tpu.vector_store %arg6[%c0_6, %c0_7], %9 {strides = array<i32>} : memref<16x64xbf16, #tpu.memory_space<vmem>>, vector<16x64xbf16>,
    %c0_i32_8 = arith.constant 0 : i32
    %11 = arith.cmpi eq, %arg2, %c0_i32_8 : i32
    %12 = arith.extui %11 : i1 to i32
    %c0_i32_9 = arith.constant 0 : i32
    %13 = arith.cmpi ne, %12, %c0_i32_9 : i32
    scf.if %13 {
      %c0_10 = arith.constant 0 : index
      %c0_11 = arith.constant 0 : index
      %14 = vector.load %arg6[%c0_10, %c0_11] : memref<16x64xbf16, #tpu.memory_space<vmem>>, vector<16x64xbf16>
      %cst_12 = arith.constant 0.000000e+00 : bf16
      %15 = vector.broadcast %cst_12 : bf16 to vector<16x64xbf16>
      %16 = arith.maximumf %14, %15 : vector<16x64xbf16>
      %c0_13 = arith.constant 0 : index
      %c0_14 = arith.constant 0 : index
      %17 = vector.load %arg6[%c0_13, %c0_14] : memref<16x64xbf16, #tpu.memory_space<vmem>>, vector<16x64xbf16>
      tpu.vector_store %arg6[%c0_13, %c0_14], %16 {strides = array<i32>} : memref<16x64xbf16, #tpu.memory_space<vmem>>, vector<16x64xbf16>,
    } else {
    }
    return
  }
  func.func @transform_0(%arg0: i32, %arg1: i32, %arg2: i32) -> (i32, i32) {
    %c0_i32 = arith.constant 0 : i32
    return %arg0, %arg2 : i32, i32
  }
  func.func @transform_1(%arg0: i32, %arg1: i32, %arg2: i32) -> (i32, i32) {
    %c0_i32 = arith.constant 0 : i32
    return %arg2, %arg1 : i32, i32
  }
  func.func @transform_2(%arg0: i32, %arg1: i32, %arg2: i32) -> (i32, i32) {
    %c0_i32 = arith.constant 0 : i32
    %c0_i32_0 = arith.constant 0 : i32
    return %c0_i32, %arg1 : i32, i32
  }
  func.func @transform_3(%arg0: i32, %arg1: i32, %arg2: i32) -> (i32, i32) {
    %c0_i32 = arith.constant 0 : i32
    return %arg0, %arg1 : i32, i32
  }
}

</mosaic_0001>

<bundles_post_ra>
// kernel: transformer_seq2seq.39
= control target key start
LH: loop header
LB: loop body
LE: loop exit
PB: predicated region body
PF: predicated region fallthrough
CT: control target
= control target key end

     0   :  { %v24_v0 = vlaneseq  ;;  %v141_v1 = vmov 0.0   ;;  %vm142_vm0 = vmmov 0   ;;  %vm56_vm1 = vcmask 261120   ;;  %s200_s1 = inlined_call_operand.vmem [shape: bf16[32,96], index: 1, kind: input, shape index: {}]   ;;  %s201_s0 = inlined_call_operand.vmem [shape: f32[16,32], index: 0, kind: input, shape index: {}]   ;;  %s202_s2 = inlined_call_operand.vmem [shape: f32[1,96], index: 2, kind: input, shape index: {}]   ;;  %s203_s3 = inlined_call_operand.vmem [shape: bf16[16,96], index: 3, kind: output, shape index: {}]  }
   0x1   :  { %129 = vmatprep.subr.bf16.mxu0 %v141_v1  ;;  %v139_v2 = vld [vmem:[%s200_s1] sm:$0xff]   ;;  %133 = vmatprep.mubr.msk.bf16.mxu0 %vm142_vm0, %v141_v1  ;;  %v140_v3 = vld [vmem:[%s200_s1 + $0x8] sm:$0xff]   ;;  %vm32_vm2 = vcmask 781312  }
   0x2   :  { %v25_v4 = vshrl.u32 %v24_v0, 7  ;;  %130 = vmatpush3.bf16.msra.mxu0 %v139_v2  ;;  %v37_v5 = vld [vmem:[%s201_s0] sm:$0xff]  ;;  %v38_v6 = vld [vmem:[%s201_s0 + $0x8] sm:$0xff] }
   0x3   :  { %v19_v7 = vld [vmem:[%s202_s2] sm:$0x1]  ;;  %131 = vmatprep.subr.bf16.mxu0 %v141_v1  ;;  %v39_v10 = vpack.c.bf16 %v38_v6, %v37_v5 }
   0x4   :  { %v20_v8 = vpack.c.bf16 %v19_v7, %v19_v7  ;;  %v26_v9 = vsub.s32 0, %v25_v4 }
   0x6   :  { %v22_v11 = vpack.i.b16 %v20_v8, %v20_v8  ;;  %132 = vmatpush3.bf16.msra.mxu0 %v140_v3 }
   0x8   :  { %v27_v12 = vrot.slane %v22_v11, %v26_v9 }
   0x9   :  { %134 = vmatmul.mubr.msk.bf16.vlgmr.msra.gmra.mrb[0].mxu0 %vm56_vm1, %v39_v10 }
   0xa   :  { %v118_v13 = vcombine.low %v27_v12, %v27_v12 }
   0xc   :  { %33 = vst.msk [vmem:[%s203_s3] sm:$0xf] %vm32_vm2, %v118_v13  ;;  %34 = vst.msk [vmem:[%s203_s3 + $0x4] sm:$0xf] %vm32_vm2, %v118_v13 }
  0x13   :  { %v35_v14 = vld [vmem:[%s203_s3] sm:$0xf]  ;;  %v36_v18 = vld [vmem:[%s203_s3 + $0x4] sm:$0xf] }
  0xdc   :  { %v94_v15 = vpop.f32.mrb[0].mxu0 }
  0xdd   :  { %v124_v16 = vpack.c.bf16 %v94_v15, %v94_v15  ;;  %v135_v17 = vpop.f32.mrb[1].mxu0 }
  0xde   :  { %v97_v19 = vpop.f32.mrb[2].mxu0 }
  0xdf   :  { %v109_v20 = vadd.bf16 %v124_v16, %v35_v14  ;;  %v125_v21 = vpack.c.bf16 %v97_v19, %v97_v19  ;;  %v136_v22 = vpop.f32.mrb[3].mxu0 }
  0xe1   :  { %112 = vst.msk [vmem:[%s203_s3] sm:$0xf] %vm32_vm2, %v109_v20  ;;  %v110_v23 = vadd.bf16 %v125_v21, %v36_v18 }
  0xe3   :  { %113 = vst.msk [vmem:[%s203_s3 + $0x4] sm:$0xf] %vm32_vm2, %v110_v23 }

// kernel: transformer_seq2seq.42
= control target key start
LH: loop header
LB: loop body
LE: loop exit
PB: predicated region body
PF: predicated region fallthrough
CT: control target
= control target key end

     0   :  { %v24_v0 = vlaneseq  ;;  %v141_v1 = vmov 0.0   ;;  %vm142_vm0 = vmmov 0   ;;  %vm56_vm1 = vcmask 261120   ;;  %s200_s1 = inlined_call_operand.vmem [shape: bf16[32,32], index: 1, kind: input, shape index: {}]   ;;  %s201_s0 = inlined_call_operand.vmem [shape: f32[16,32], index: 0, kind: input, shape index: {}]   ;;  %s202_s2 = inlined_call_operand.vmem [shape: f32[1,32], index: 2, kind: input, shape index: {}]   ;;  %s203_s3 = inlined_call_operand.vmem [shape: bf16[16,32], index: 3, kind: output, shape index: {}]  }
   0x1   :  { %129 = vmatprep.subr.bf16.mxu0 %v141_v1  ;;  %v139_v2 = vld [vmem:[%s200_s1] sm:$0xff]   ;;  %133 = vmatprep.mubr.msk.bf16.mxu0 %vm142_vm0, %v141_v1  ;;  %v140_v3 = vld [vmem:[%s200_s1 + $0x8] sm:$0xff]   ;;  %vm32_vm2 = vcmask 257024  }
   0x2   :  { %v25_v4 = vshrl.u32 %v24_v0, 7  ;;  %130 = vmatpush3.bf16.msra.mxu0 %v139_v2  ;;  %v37_v5 = vld [vmem:[%s201_s0] sm:$0xff]  ;;  %v38_v6 = vld [vmem:[%s201_s0 + $0x8] sm:$0xff] }
   0x3   :  { %v19_v7 = vld [vmem:[%s202_s2] sm:$0x1]  ;;  %131 = vmatprep.subr.bf16.mxu0 %v141_v1  ;;  %v39_v10 = vpack.c.bf16 %v38_v6, %v37_v5 }
   0x4   :  { %v20_v8 = vpack.c.bf16 %v19_v7, %v19_v7  ;;  %v26_v9 = vsub.s32 0, %v25_v4 }
   0x6   :  { %v22_v11 = vpack.i.b16 %v20_v8, %v20_v8  ;;  %132 = vmatpush3.bf16.msra.mxu0 %v140_v3 }
   0x8   :  { %v27_v12 = vrot.slane %v22_v11, %v26_v9 }
   0x9   :  { %134 = vmatmul.mubr.msk.bf16.vlgmr.msra.gmra.mrb[0].mxu0 %vm56_vm1, %v39_v10 }
   0xa   :  { %v118_v13 = vcombine.low %v27_v12, %v27_v12 }
   0xc   :  { %33 = vst.msk [vmem:[%s203_s3] sm:$0xf] %vm32_vm2, %v118_v13  ;;  %34 = vst.msk [vmem:[%s203_s3 + $0x4] sm:$0xf] %vm32_vm2, %v118_v13 }
  0x13   :  { %v35_v14 = vld [vmem:[%s203_s3] sm:$0xf]  ;;  %v36_v18 = vld [vmem:[%s203_s3 + $0x4] sm:$0xf] }
  0xdc   :  { %v94_v15 = vpop.f32.mrb[0].mxu0 }
  0xdd   :  { %v124_v16 = vpack.c.bf16 %v94_v15, %v94_v15  ;;  %v135_v17 = vpop.f32.mrb[1].mxu0 }
  0xde   :  { %v97_v19 = vpop.f32.mrb[2].mxu0 }
  0xdf   :  { %v109_v20 = vadd.bf16 %v124_v16, %v35_v14  ;;  %v125_v21 = vpack.c.bf16 %v97_v19, %v97_v19  ;;  %v136_v22 = vpop.f32.mrb[3].mxu0 }
  0xe1   :  { %112 = vst.msk [vmem:[%s203_s3] sm:$0xf] %vm32_vm2, %v109_v20  ;;  %v110_v23 = vadd.bf16 %v125_v21, %v36_v18 }
  0xe3   :  { %113 = vst.msk [vmem:[%s203_s3 + $0x4] sm:$0xf] %vm32_vm2, %v110_v23 }

// kernel: transformer_seq2seq.41
= control target key start
LH: loop header
LB: loop body
LE: loop exit
PB: predicated region body
PF: predicated region fallthrough
CT: control target
= control target key end

     0   :  { %vm28_vm0 = vcmask 261120   ;;  %v201_v0 = vmov 0.0   ;;  %vm202_vm1 = vmmov 0   ;;  %s279_s1 = inlined_call_operand.vmem [shape: bf16[32,32], index: 1, kind: input, shape index: {}]   ;;  %s280_s0 = inlined_call_operand.vmem [shape: bf16[16,32], index: 0, kind: input, shape index: {}]   ;;  %s281_s2 = inlined_call_operand.vmem [shape: f32[1,32], index: 2, kind: input, shape index: {}]   ;;  %s282_s3 = inlined_call_operand.vmem [shape: f32[16,32], index: 3, kind: input, shape index: {}]   ;;  %s283_s4 = inlined_call_operand.vmem [shape: f32[1,32], index: 4, kind: input, shape index: {}]   ;;  %s284_s5 = inlined_call_operand.vmem [shape: f32[1,32], index: 5, kind: input, shape index: {}]   ;;  %s285_s6 = inlined_call_operand.vmem [shape: f32[16,32], index: 6, kind: output, shape index: {}]  }
   0x1   :  { %184 = vmatprep.subr.bf16.mxu0 %v201_v0  ;;  %v194_v1 = vld [vmem:[%s279_s1] sm:$0xff]   ;;  %188 = vmatprep.mubr.msk.bf16.mxu0 %vm202_vm1, %v201_v0  ;;  %29 = vst.msk [vmem:[#allocation2] sm:$0xff] %vm28_vm0, %v201_v0  ;;  %30 = vst.msk [vmem:[#allocation2 + $0x8] sm:$0xff] %vm28_vm0, %v201_v0  ;;  %v195_v2 = vld [vmem:[%s279_s1 + $0x8] sm:$0xff]  }
   0x2   :  { %185 = vmatpush3.bf16.msra.mxu0 %v194_v1  ;;  %v196_v3 = vld [vmem:[%s280_s0] sm:$0xff]   ;;  %v120_v17 = vld [vmem:[%s282_s3 + $0x8] sm:$0xff] }
   0x3   :  { %186 = vmatprep.subr.bf16.mxu0 %v201_v0  ;;  %v178_v12 = vld [vmem:[%s281_s2] ss:$0 sm:$0xff] }
   0x4   :  { %v119_v14 = vld [vmem:[%s282_s3] sm:$0xff] }
   0x5   :  { %v179_v40 = vld [vmem:[%s283_s4] ss:$0 sm:$0xff] }
   0x6   :  { %187 = vmatpush3.bf16.msra.mxu0 %v195_v2  ;;  %v180_v42 = vld [vmem:[%s284_s5] ss:$0 sm:$0xff] }
   0x8   :  { %v31_v4 = vld [vmem:[#allocation2] sm:$0xff]  ;;  %v32_v6 = vld [vmem:[#allocation2 + $0x8] sm:$0xff] }
   0x9   :  { %189 = vmatmul.mubr.msk.bf16.vlgmr.msra.gmra.mrb[0].mxu0 %vm28_vm0, %v196_v3 }
  0xdc   :  { %v94_v5 = vpop.f32.mrb[0].mxu0 }
  0xdd   :  { %v101_v7 = vadd.f32 %v94_v5, %v31_v4  ;;  %v190_v8 = vpop.f32.mrb[1].mxu0 }
  0xde   :  { %v97_v9 = vpop.f32.mrb[2].mxu0 }
  0xdf   :  { %103 = vst.msk [vmem:[#allocation2] sm:$0xff] %vm28_vm0, %v101_v7  ;;  %v102_v10 = vadd.f32 %v97_v9, %v32_v6  ;;  %v191_v11 = vpop.f32.mrb[3].mxu0 }
  0xe1   :  { %104 = vst.msk [vmem:[#allocation2 + $0x8] sm:$0xff] %vm28_vm0, %v102_v10 }
  0xe6   :  { %v108_v13 = vld [vmem:[#allocation2] sm:$0xff] }
  0xe7   :  { %v117_v15 = vadd.f32 %v178_v12, %v108_v13 }
  0xe8   :  { %v109_v16 = vld [vmem:[#allocation2 + $0x8] sm:$0xff] }
  0xe9   :  { %v121_v18 = vadd.f32 %v119_v14, %v117_v15  ;;  %v118_v19 = vadd.f32 %v178_v12, %v109_v16 }
  0xeb   :  { %v123_v20 = vsel %vm28_vm0, %v121_v18, 0.0  ;;  %v122_v21 = vadd.f32 %v120_v17, %v118_v19 }
  0xec   :  { %124 = vadd.xlane.f32.xlu0 %v123_v20 }
  0xed   :  { %v126_v22 = vsel %vm28_vm0, %v122_v21, 0.0 }
  0xf0   :  { %127 = vadd.xlane.f32.xlu0 %v126_v22 }
 0x179   :  { %v125_v23 = vpop.xlane.xlu0 %124 }
 0x17a   :  { %v130_v24 = vmul.f32 0.03125, %v125_v23 }
 0x17c   :  { %v132_v25 = vsub.f32 %v121_v18, %v130_v24 }
 0x17d   :  { %v128_v26 = vpop.xlane.xlu0 %127 }
 0x17e   :  { %v131_v27 = vmul.f32 0.03125, %v128_v26  ;;  %v134_v28 = vmul.f32 %v132_v25, %v132_v25 }
 0x180   :  { %v133_v29 = vsub.f32 %v122_v21, %v131_v27  ;;  %v136_v30 = vsel %vm28_vm0, %v134_v28, 0.0 }
 0x181   :  { %137 = vadd.xlane.f32.xlu1 %v136_v30 }
 0x182   :  { %v135_v31 = vmul.f32 %v133_v29, %v133_v29 }
 0x184   :  { %v139_v32 = vsel %vm28_vm0, %v135_v31, 0.0 }
 0x185   :  { %140 = vadd.xlane.f32.xlu1 %v139_v32 }
 0x20e   :  { %v138_v33 = vpop.xlane.xlu1 %137 }
 0x20f   :  { %v142_v34 = vmul.f32 0.03125, %v138_v33 }
 0x211   :  { %v144_v35 = vadd.f32 1e-05, %v142_v34 }
 0x212   :  { %v141_v36 = vpop.xlane.xlu1 %140 }
 0x213   :  { %197 = vrsqrt.f32 %v144_v35  ;;  %v143_v37 = vmul.f32 0.03125, %v141_v36 }
 0x215   :  { %v145_v38 = vadd.f32 1e-05, %v143_v37 }
 0x217   :  { %199 = vrsqrt.f32 %v145_v38 }
 0x21d   :  { %v198_v39 = vpop.eup %197 }
 0x21e   :  { %v148_v41 = vmul.f32 %v198_v39, %v132_v25 }
 0x220   :  { %v157_v43 = vmul.f32 %v179_v40, %v148_v41 }
 0x221   :  { %v200_v44 = vpop.eup %199 }
 0x222   :  { %v166_v45 = vadd.f32 %v180_v42, %v157_v43  ;;  %v149_v46 = vmul.f32 %v200_v44, %v133_v29 }
 0x224   :  { %168 = vst.msk [vmem:[%s285_s6] sm:$0xff] %vm28_vm0, %v166_v45  ;;  %v158_v47 = vmul.f32 %v179_v40, %v149_v46 }
 0x226   :  { %v167_v48 = vadd.f32 %v180_v42, %v158_v47 }
 0x228   :  { %169 = vst.msk [vmem:[%s285_s6 + $0x8] sm:$0xff] %vm28_vm0, %v167_v48 }

// kernel: transformer_seq2seq.40
= control target key start
LH: loop header
LB: loop body
LE: loop exit
PB: predicated region body
PF: predicated region fallthrough
CT: control target
= control target key end

     0   :  { %s639_s12 = smov 0   ;;  %s641_s13 = smov 0   ;;  %s695_s0 = inlined_call_operand.vmem [shape: bf16[8,8,8], index: 0, kind: input, shape index: {}]   ;;  %s696_s1 = inlined_call_operand.vmem [shape: bf16[8,8,8], index: 1, kind: input, shape index: {}]   ;;  %s697_s2 = inlined_call_operand.vmem [shape: bf16[8,8,8], index: 2, kind: input, shape index: {}]   ;;  %s698_s3 = inlined_call_operand.vmem [shape: bf16[8,8,8], index: 3, kind: output, shape index: {}]  }
   0x1   :  { %s643_s14 = smov 0  }
   0x2 LB: > { %s32_s15 = sadd.s32 1, %s609_s13  ;;  %p530_p0 = scmp.ge.s32.totalorder %s613_s14, 1  ;;  %s613_s14 = sphi %s643_s14, %s13_s14   ;;  %s609_s13 = sphi %s641_s13, %s700_s13   ;;  %s605_s12 = sphi %s639_s12, %s699_s12  }
   0x3   : > { %p34_p1 = scmp.ge.s32.totalorder %s32_s15, 8  ;;  %p190_p2 = scmp.lt.s32.totalorder %s613_s14, 9 }
   0x5   : > { %s702_s15 = smov (%p34_p1, %s32_s15), 0  ;;  %p191_p3 = pnand %p530_p0, %p190_p2 }
   0x6   : > { %p232_p4 = scmp.lt.s32.totalorder (!%p191_p3), %s605_s12, 7  ;;  %vm269_vm0 = vcmask (!%p191_p3), 64512   ;;  %v615_v0 = vmov (!%p191_p3), 0.0   ;;  %vm616_vm1 = vmmov (!%p191_p3), 0   ;;  %vm266_vm2 = vcmask (!%p191_p3), 7168  }
   0x7   : > { %194 = sbr.rel (%p191_p3) target bundleno = 823 (0x337), region = 32  ;;  %543 = vmatprep.subr.bf16.mxu0 (!%p191_p3), %v615_v0  ;;  %270 = vst.msk [vmem:[#allocation4] sm:$0xff] (!%p191_p3), %vm269_vm0, %v615_v0  ;;  %545 = vmatprep.mubr.msk.bf16.mxu0 (!%p191_p3), %vm616_vm1, %v615_v0  ;;  %v617_v5 = vmov (!%p191_p3), -inf   ;;  %v618_v11 = vmov (!%p191_p3), 0   ;;  %vm357_vm3 = vcmask (!%p191_p3), 1043456   ;;  %vm417_vm4 = vcmask (!%p191_p3), 60416  }
   0x8   : > { %549 = vmatprep.subr.bf16.mxu1 (!%p191_p3), %v615_v0  ;;  %551 = vmatprep.mubr.msk.bf16.mxu1 (!%p191_p3), %vm616_vm1, %v615_v0  ;;  %267 = vst.msk [vmem:[#allocation2] sm:$0xff] (!%p191_p3), %vm266_vm2, %v617_v5  ;;  %268 = vst.msk [vmem:[#allocation3] sm:$0xff] (!%p191_p3), %vm266_vm2, %v615_v0 }
   0x9   : > { %583 = vset.pattern.permute.xlu0 (!%p191_p3), %v618_v11  ;;  %584 = vset.pattern.permute.xlu1 (!%p191_p3), %v618_v11 }
   0xe   : > { %s704_s12 = smov (!%p232_p4, %s605_s12), 7  ;;  %v345_v32 = vld [vmem:[#allocation4] sm:$0xff] }
   0xf   : > { %s658_s16 = sshll.u32 %s704_s12, 2  ;;  %v321_v12 = vld [vmem:[#allocation2] sm:$0xff]  ;;  %v337_v26 = vld [vmem:[#allocation3] sm:$0xff] }
  0x10   : > { %s245_s19 = scalar_lea.vmem %s696_s1, %s658_s16  ;;  %s238_s22 = scalar_lea.vmem %s695_s0, %s658_s16 }
  0x11   : > { %v273_v1 = vld [vmem:[%s245_s19] sm:$0xf]  ;;  %s252_s25 = scalar_lea.vmem %s697_s2, %s658_s16  ;;  %s259_s28 = scalar_lea.vmem %s698_s3, %s658_s16 }
  0x12   : > { %v279_v2 = vsel %vm269_vm0, %v273_v1, 0  ;;  %v271_v3 = vld [vmem:[%s238_s22] sm:$0xf] }
  0x13   : > { %544 = vmatpush3.bf16.xpose.msra.mxu0 %v279_v2  ;;  %v272_v4 = vmul.bf16 1052065461, %v271_v3  ;;  %v353_v16 = vld [vmem:[%s252_s25] sm:$0xf] }
  0x14   : > { %v359_v17 = vsel %vm357_vm3, %v353_v16, 0 }
  0x15   : > { %550 = vmatpush3.bf16.msra.mxu1 %v359_v17 }
  0x1a   : > { %546 = vmatmul.mubr.msk.bf16.vlgmr.msra.gmra.mrb[0].mxu0 %vm269_vm0, %v272_v4 }
  0xed   : > { %v315_v6 = vpop.f32.mrb[0].mxu0 }
  0xee   : > { %v547_v7 = vpop.f32.mrb[1].mxu0  ;;  %v322_v8 = vsel %vm269_vm0, %v315_v6, -inf }
  0xef   : > { %323 = vmax.xlane.f32.xlu0 %v322_v8  ;;  %v318_v9 = vpop.f32.mrb[2].mxu0 }
  0xf0   : > { %v548_v10 = vpop.f32.mrb[3].mxu0 }
 0x17c   : > { %v324_v13 = vpop.xlane.xlu0 %323 }
 0x17d   : > { %v325_v14 = vmax.f32 %v321_v12, %v324_v13 }
 0x17f   : > { %v326_v15 = vsub.f32 %v321_v12, %v325_v14  ;;  %403 = vst.msk [vmem:[#allocation2] sm:$0xff] %vm266_vm2, %v325_v14  ;;  %331 = vperm.xlu0 %583, %v325_v14  }
 0x181   : > { %v327_v24 = vmul.f32 1.442695, %v326_v15 }
 0x1fe   : > { %v332_v18 = vpop.permute.xlu0 %331 }
 0x1ff   : > { %v334_v19 = vsub.f32 %v315_v6, %v332_v18 }
 0x201   : > { %v335_v20 = vmul.f32 1.442695, %v334_v19 }
 0x203   : > { %585 = vpow2.f32 %v335_v20 }
 0x204   : > { %587 = vpow2.f32 %v327_v24 }
 0x20d   : > { %v586_v21 = vpop.eup %585 }
 0x20e   : > { %v339_v22 = vsel %vm269_vm0, %v586_v21, 0.0  ;;  %v352_v23 = vpack.c.bf16 %v586_v21, %v586_v21  ;;  %v588_v25 = vpop.eup %587 }
 0x20f   : > { %340 = vadd.xlane.f32.xlu1 %v339_v22  ;;  %v338_v27 = vmul.f32 %v588_v25, %v337_v26 }
 0x210   : > { %552 = vmatmul.mubr.msk.bf16.vlgmr.msra.gmra.mrb[0].mxu1 %vm269_vm0, %v352_v23 }
 0x220   : > { %348 = vperm.xlu1 %584, %v588_v25  }
 0x29c   : > { %v341_v28 = vpop.xlane.xlu1 %340 }
 0x29d   : > { %v342_v29 = vadd.f32 %v341_v28, %v338_v27 }
 0x29f   : > { %344 = vst.msk [vmem:[#allocation3] sm:$0xff] %vm266_vm2, %v342_v29 }
 0x2a0   : > { %v349_v33 = vpop.permute.xlu1 %348 }
 0x2a1   : > { %v351_v34 = vmul.f32 %v349_v33, %v345_v32 }
 0x2a6   : > { %v408_v30 = vld [vmem:[#allocation3] sm:$0xff] }
 0x2a7   : > { %589 = vrcp.f32 %v408_v30 }
 0x2b1   : > { %v590_v31 = vpop.eup %589 }
 0x2b2   : > { %412 = vperm.xlu1 %584, %v590_v31  }
 0x2e3   : > { %v395_v35 = vpop.f32.mrb[0].mxu1 }
 0x2e4   : > { %v401_v36 = vadd.f32 %v395_v35, %v351_v34  ;;  %v553_v37 = vpop.f32.mrb[1].mxu1 }
 0x2e5   : > { %v398_v38 = vpop.f32.mrb[2].mxu1 }
 0x2e6   : > { %402 = vst.msk [vmem:[#allocation4] sm:$0xff] %vm269_vm0, %v401_v36  ;;  %v554_v39 = vpop.f32.mrb[3].mxu1 }
 0x2ed   : > { %v407_v40 = vld [vmem:[#allocation4] sm:$0xff] }
 0x331   : > { %v413_v41 = vpop.permute.xlu1 %412 }
 0x332   : > { %v415_v42 = vmul.f32 %v413_v41, %v407_v40 }
 0x334   : > { %v416_v43 = vpack.c.bf16 %v415_v42, %v415_v42 }
 0x336   : > { %418 = vst.msk [vmem:[%s259_s28] sm:$0xf] %vm417_vm4, %v416_v43 }
 0x337 PF: > { %s13_s14 = sadd.s32 1, %s613_s14   ;;  %s699_s12 = smov %s609_s13 }
 0x338   : > { %p10_p5 = scmp.ge.s32.totalorder %s13_s14, 10   ;;  %s700_s13 = smov %s702_s15 }
 0x33a   :  { %12 = sbr.rel (!%p10_p5) target bundleno = 2 (0x2), region = 76 }

// kernel: transformer_seq2seq.57
= control target key start
LH: loop header
LB: loop body
LE: loop exit
PB: predicated region body
PF: predicated region fallthrough
CT: control target
= control target key end

     0   :  { %v161_v1 = vmov 0.0   ;;  %vm162_vm0 = vmmov 0   ;;  %s213_s0 = inlined_call_operand.vmem [shape: f32[16,32], index: 0, kind: input, shape index: {}]   ;;  %s214_s1 = inlined_call_operand.vmem [shape: bf16[32,128], index: 1, kind: input, shape index: {}]   ;;  %s215_s2 = inlined_call_operand.vmem [shape: f32[1,128], index: 2, kind: input, shape index: {}]   ;;  %s216_s3 = inlined_call_operand.hbm [shape: f32[16,128], index: 3, kind: output, shape index: {}]  }
   0x1   :  { %v135_v0 = vld [vmem:[%s214_s1] sm:$0xff]   ;;  %122 = vmatprep.subr.bf16.mxu0 %v161_v1  ;;  %v136_v2 = vld [vmem:[%s214_s1 + $0x8] sm:$0xff]   ;;  %126 = vmatprep.mubr.msk.bf16.mxu0 %vm162_vm0, %v161_v1 }
   0x2   :  { %123 = vmatpush3.bf16.msra.mxu0 %v135_v0  ;;  %v31_v3 = vld [vmem:[%s213_s0] sm:$0xff]  ;;  %v32_v4 = vld [vmem:[%s213_s0 + $0x8] sm:$0xff] }
   0x3   :  { %124 = vmatprep.subr.bf16.mxu0 %v161_v1 }
   0x4   :  { %8 = vsyncpa [#allocation3], 0  ;;  %v33_v5 = vpack.c.bf16 %v32_v4, %v31_v3  ;;  %vm50_vm1 = vcmask 261120   ;;  %v115_v6 = vld [vmem:[%s215_s2] ss:$0 sm:$0xff]  ;;  %s163_s1 = smov [#allocation2]  }
   0x5   :  { %s104_s22 = sshll.u32 %s163_s1, 4  ;;  %s105_s22 = int_to_ptr.vmem [resolvable:$true] %s104_s22 }
   0x6   :  { %125 = vmatpush3.bf16.msra.mxu0 %v136_v2  ;;  %s137_s0 = scalar_lea.vmem %s105_s22, 256  ;;  %p142_p1 = scmp.lt.s32.totalorder %s105_s22, %s105_s22 }
   0x7   :  { %p138_p0 = scmp.ne.s32.totalorder %s105_s22, %s137_s0  ;;  %p143_p2 = scmp.lt.s32.totalorder %s137_s0, %s137_s0 }
   0x9   :  { %127 = vmatmul.mubr.msk.bf16.vlgmr.msra.gmra.mrb[0].mxu0 %vm50_vm1, %v33_v5  ;;  %p144_p3 = por %p143_p2, %p142_p1 }
   0xb   :  { %p145_p4 = pnand %p144_p3, %p138_p0 }
  0xdc   :  { %v88_v7 = vpop.f32.mrb[0].mxu0 }
  0xdd   :  { %v95_v8 = vadd.f32 %v115_v6, %v88_v7  ;;  %v128_v9 = vpop.f32.mrb[1].mxu0 }
  0xde   :  { %v91_v10 = vpop.f32.mrb[2].mxu0 }
  0xdf   :  { %97 = vst [vmem:[#allocation2] sm:$0xff] %v95_v8  ;;  %v96_v11 = vadd.f32 %v115_v6, %v91_v10  ;;  %v129_v12 = vpop.f32.mrb[3].mxu0 }
  0xe1   :  { %98 = vst [vmem:[#allocation2 + $0x8] sm:$0xff] %v96_v11 }
  0xe2   :  { %148 = shalt.err (!%p145_p4)
}
  0xe3   :  { %s149_s24 = scalar_lea.hbm %s216_s3, 256 }
  0xe4   :  { %p150_p5 = scmp.ne.s32.totalorder %s216_s3, %s149_s24  ;;  %p153_p6 = scmp.lt.u32.totalorder %s149_s24, %s216_s3 }
  0xe6   :  { %p155_p7 = pnand %p153_p6, %p150_p5 }
  0xe8   :  { %158 = shalt.err (!%p155_p7)
}
  0xe9   :  { %s164_s29 = smov 128   ;;  %s165_s30 = smov 8  }
  0xea   :  { %110 = dma.vmem_to_hbm [thread:$0]  %s105_s22, 256, %s216_s3, [#allocation3], %s164_s29, %s164_s29, %s165_s30  }
  0xeb   :  { %159 = dma.done.wait [#allocation3], 256  }
  0xec   :  { %160 = vsyncadd [#allocation3], 4294967040 }
  0xed   :  { %114 = vsyncpa [#allocation3], 1 }

// kernel: transformer_seq2seq.43
= control target key start
LH: loop header
LB: loop body
LE: loop exit
PB: predicated region body
PF: predicated region fallthrough
CT: control target
= control target key end

     0   :  { %v24_v0 = vlaneseq  ;;  %v141_v1 = vmov 0.0   ;;  %vm142_vm0 = vmmov 0   ;;  %vm56_vm1 = vcmask 261120   ;;  %s200_s1 = inlined_call_operand.vmem [shape: bf16[32,64], index: 1, kind: input, shape index: {}]   ;;  %s201_s0 = inlined_call_operand.vmem [shape: f32[16,32], index: 0, kind: input, shape index: {}]   ;;  %s202_s2 = inlined_call_operand.vmem [shape: f32[1,64], index: 2, kind: input, shape index: {}]   ;;  %s203_s3 = inlined_call_operand.vmem [shape: bf16[16,64], index: 3, kind: output, shape index: {}]  }
   0x1   :  { %129 = vmatprep.subr.bf16.mxu0 %v141_v1  ;;  %v139_v2 = vld [vmem:[%s200_s1] sm:$0xff]   ;;  %133 = vmatprep.mubr.msk.bf16.mxu0 %vm142_vm0, %v141_v1  ;;  %v140_v3 = vld [vmem:[%s200_s1 + $0x8] sm:$0xff]   ;;  %vm32_vm2 = vcmask 519168  }
   0x2   :  { %v25_v4 = vshrl.u32 %v24_v0, 7  ;;  %130 = vmatpush3.bf16.msra.mxu0 %v139_v2  ;;  %v37_v5 = vld [vmem:[%s201_s0] sm:$0xff]  ;;  %v38_v6 = vld [vmem:[%s201_s0 + $0x8] sm:$0xff] }
   0x3   :  { %v19_v7 = vld [vmem:[%s202_s2] sm:$0x1]  ;;  %131 = vmatprep.subr.bf16.mxu0 %v141_v1  ;;  %v39_v10 = vpack.c.bf16 %v38_v6, %v37_v5 }
   0x4   :  { %v20_v8 = vpack.c.bf16 %v19_v7, %v19_v7  ;;  %v26_v9 = vsub.s32 0, %v25_v4 }
   0x6   :  { %v22_v11 = vpack.i.b16 %v20_v8, %v20_v8  ;;  %132 = vmatpush3.bf16.msra.mxu0 %v140_v3 }
   0x8   :  { %v27_v12 = vrot.slane %v22_v11, %v26_v9 }
   0x9   :  { %134 = vmatmul.mubr.msk.bf16.vlgmr.msra.gmra.mrb[0].mxu0 %vm56_vm1, %v39_v10 }
   0xa   :  { %v118_v13 = vcombine.low %v27_v12, %v27_v12 }
   0xc   :  { %33 = vst.msk [vmem:[%s203_s3] sm:$0xf] %vm32_vm2, %v118_v13  ;;  %34 = vst.msk [vmem:[%s203_s3 + $0x4] sm:$0xf] %vm32_vm2, %v118_v13 }
  0x13   :  { %v35_v14 = vld [vmem:[%s203_s3] sm:$0xf]  ;;  %v36_v18 = vld [vmem:[%s203_s3 + $0x4] sm:$0xf] }
  0xdc   :  { %v94_v15 = vpop.f32.mrb[0].mxu0 }
  0xdd   :  { %v124_v16 = vpack.c.bf16 %v94_v15, %v94_v15  ;;  %v135_v17 = vpop.f32.mrb[1].mxu0 }
  0xde   :  { %v97_v19 = vpop.f32.mrb[2].mxu0 }
  0xdf   :  { %v109_v20 = vadd.bf16 %v124_v16, %v35_v14  ;;  %v125_v21 = vpack.c.bf16 %v97_v19, %v97_v19  ;;  %v136_v22 = vpop.f32.mrb[3].mxu0 }
  0xe1   :  { %112 = vst.msk [vmem:[%s203_s3] sm:$0xf] %vm32_vm2, %v109_v20  ;;  %v110_v23 = vadd.bf16 %v125_v21, %v36_v18 }
  0xe3   :  { %113 = vst.msk [vmem:[%s203_s3 + $0x4] sm:$0xf] %vm32_vm2, %v110_v23 }

// kernel: transformer_seq2seq.33
= control target key start
LH: loop header
LB: loop body
LE: loop exit
PB: predicated region body
PF: predicated region fallthrough
CT: control target
= control target key end

     0   :  { %vm28_vm0 = vcmask 261120   ;;  %v228_v0 = vmov 0.0   ;;  %vm229_vm1 = vmmov 0   ;;  %vm72_vm2 = vcmask 523264   ;;  %s311_s1 = inlined_call_operand.vmem [shape: bf16[64,32], index: 1, kind: input, shape index: {}]   ;;  %s312_s0 = inlined_call_operand.vmem [shape: bf16[16,64], index: 0, kind: input, shape index: {}]   ;;  %s313_s2 = inlined_call_operand.vmem [shape: f32[1,32], index: 2, kind: input, shape index: {}]   ;;  %s314_s3 = inlined_call_operand.vmem [shape: f32[16,32], index: 3, kind: input, shape index: {}]   ;;  %s315_s4 = inlined_call_operand.vmem [shape: f32[1,32], index: 4, kind: input, shape index: {}]   ;;  %s316_s5 = inlined_call_operand.vmem [shape: f32[1,32], index: 5, kind: input, shape index: {}]   ;;  %s317_s6 = inlined_call_operand.vmem [shape: f32[16,32], index: 6, kind: output, shape index: {}]  }
   0x1   :  { %205 = vmatprep.subr.bf16.mxu0 %v228_v0  ;;  %v219_v1 = vld [vmem:[%s311_s1] sm:$0xff]   ;;  %213 = vmatprep.mubr.msk.bf16.mxu0 %vm229_vm1, %v228_v0  ;;  %29 = vst.msk [vmem:[#allocation2] sm:$0xff] %vm28_vm0, %v228_v0  ;;  %30 = vst.msk [vmem:[#allocation2 + $0x8] sm:$0xff] %vm28_vm0, %v228_v0  ;;  %v220_v2 = vld [vmem:[%s311_s1 + $0x8] sm:$0xff]  }
   0x2   :  { %206 = vmatpush3.bf16.msra.mxu0 %v219_v1  ;;  %v221_v3 = vld [vmem:[%s311_s1 + $0x10] sm:$0xff]   ;;  %v222_v4 = vld [vmem:[%s311_s1 + $0x18] sm:$0xff]   ;;  %v223_v5 = vld [vmem:[%s312_s0] sm:$0xff]  }
   0x3   :  { %207 = vmatprep.subr.bf16.mxu0 %v228_v0  ;;  %v197_v14 = vld [vmem:[%s313_s2] ss:$0 sm:$0xff]  ;;  %v137_v19 = vld [vmem:[%s314_s3 + $0x8] sm:$0xff] }
   0x4   :  { %v136_v16 = vld [vmem:[%s314_s3] sm:$0xff] }
   0x5   :  { %v198_v42 = vld [vmem:[%s315_s4] ss:$0 sm:$0xff] }
   0x6   :  { %208 = vmatpush3.bf16.msra.mxu0 %v220_v2  ;;  %v199_v44 = vld [vmem:[%s316_s5] ss:$0 sm:$0xff] }
   0x7   :  { %209 = vmatprep.subr.bf16.mxu0 %v228_v0 }
   0x8   :  { %v31_v6 = vld [vmem:[#allocation2] sm:$0xff]  ;;  %v32_v8 = vld [vmem:[#allocation2 + $0x8] sm:$0xff] }
   0xa   :  { %210 = vmatpush3.bf16.msra.mxu0 %v221_v3 }
   0xb   :  { %211 = vmatprep.subr.bf16.mxu0 %v228_v0 }
   0xe   :  { %212 = vmatpush3.bf16.msra.mxu0 %v222_v4 }
  0x11   :  { %214 = vmatmul.mubr.msk.bf16.vlgmr.msra.gmra.mrb[0].mxu0 %vm72_vm2, %v223_v5 }
  0xe4   :  { %v110_v7 = vpop.f32.mrb[0].mxu0 }
  0xe5   :  { %v117_v9 = vadd.f32 %v110_v7, %v31_v6  ;;  %v215_v10 = vpop.f32.mrb[1].mxu0 }
  0xe6   :  { %v113_v11 = vpop.f32.mrb[2].mxu0 }
  0xe7   :  { %120 = vst.msk [vmem:[#allocation2] sm:$0xff] %vm28_vm0, %v117_v9  ;;  %v118_v12 = vadd.f32 %v113_v11, %v32_v8  ;;  %v216_v13 = vpop.f32.mrb[3].mxu0 }
  0xe9   :  { %121 = vst.msk [vmem:[#allocation2 + $0x8] sm:$0xff] %vm28_vm0, %v118_v12 }
  0xee   :  { %v125_v15 = vld [vmem:[#allocation2] sm:$0xff] }
  0xef   :  { %v134_v17 = vadd.f32 %v197_v14, %v125_v15 }
  0xf0   :  { %v126_v18 = vld [vmem:[#allocation2 + $0x8] sm:$0xff] }
  0xf1   :  { %v138_v20 = vadd.f32 %v136_v16, %v134_v17  ;;  %v135_v21 = vadd.f32 %v197_v14, %v126_v18 }
  0xf3   :  { %v140_v22 = vsel %vm28_vm0, %v138_v20, 0.0  ;;  %v139_v23 = vadd.f32 %v137_v19, %v135_v21 }
  0xf4   :  { %141 = vadd.xlane.f32.xlu0 %v140_v22 }
  0xf5   :  { %v143_v24 = vsel %vm28_vm0, %v139_v23, 0.0 }
  0xf8   :  { %144 = vadd.xlane.f32.xlu0 %v143_v24 }
 0x181   :  { %v142_v25 = vpop.xlane.xlu0 %141 }
 0x182   :  { %v147_v26 = vmul.f32 0.03125, %v142_v25 }
 0x184   :  { %v149_v27 = vsub.f32 %v138_v20, %v147_v26 }
 0x185   :  { %v145_v28 = vpop.xlane.xlu0 %144 }
 0x186   :  { %v148_v29 = vmul.f32 0.03125, %v145_v28  ;;  %v151_v30 = vmul.f32 %v149_v27, %v149_v27 }
 0x188   :  { %v150_v31 = vsub.f32 %v139_v23, %v148_v29  ;;  %v153_v32 = vsel %vm28_vm0, %v151_v30, 0.0 }
 0x189   :  { %154 = vadd.xlane.f32.xlu1 %v153_v32 }
 0x18a   :  { %v152_v33 = vmul.f32 %v150_v31, %v150_v31 }
 0x18c   :  { %v156_v34 = vsel %vm28_vm0, %v152_v33, 0.0 }
 0x18d   :  { %157 = vadd.xlane.f32.xlu1 %v156_v34 }
 0x216   :  { %v155_v35 = vpop.xlane.xlu1 %154 }
 0x217   :  { %v159_v36 = vmul.f32 0.03125, %v155_v35 }
 0x219   :  { %v161_v37 = vadd.f32 1e-05, %v159_v36 }
 0x21a   :  { %v158_v38 = vpop.xlane.xlu1 %157 }
 0x21b   :  { %224 = vrsqrt.f32 %v161_v37  ;;  %v160_v39 = vmul.f32 0.03125, %v158_v38 }
 0x21d   :  { %v162_v40 = vadd.f32 1e-05, %v160_v39 }
 0x21f   :  { %226 = vrsqrt.f32 %v162_v40 }
 0x225   :  { %v225_v41 = vpop.eup %224 }
 0x226   :  { %v165_v43 = vmul.f32 %v225_v41, %v149_v27 }
 0x228   :  { %v174_v45 = vmul.f32 %v198_v42, %v165_v43 }
 0x229   :  { %v227_v46 = vpop.eup %226 }
 0x22a   :  { %v183_v47 = vadd.f32 %v199_v44, %v174_v45  ;;  %v166_v48 = vmul.f32 %v227_v46, %v150_v31 }
 0x22c   :  { %185 = vst.msk [vmem:[%s317_s6] sm:$0xff] %vm28_vm0, %v183_v47  ;;  %v175_v49 = vmul.f32 %v198_v42, %v166_v48 }
 0x22e   :  { %v184_v50 = vadd.f32 %v199_v44, %v175_v49 }
 0x230   :  { %186 = vst.msk [vmem:[%s317_s6 + $0x8] sm:$0xff] %vm28_vm0, %v184_v50 }

// kernel: transformer_seq2seq.32
= control target key start
LH: loop header
LB: loop body
LE: loop exit
PB: predicated region body
PF: predicated region fallthrough
CT: control target
= control target key end

     0   :  { %v24_v0 = vlaneseq  ;;  %v151_v1 = vmov 0.0   ;;  %vm152_vm0 = vmmov 0   ;;  %vm56_vm1 = vcmask 261120   ;;  %s225_s1 = inlined_call_operand.vmem [shape: bf16[32,64], index: 1, kind: input, shape index: {}]   ;;  %s226_s0 = inlined_call_operand.vmem [shape: f32[16,32], index: 0, kind: input, shape index: {}]   ;;  %s227_s2 = inlined_call_operand.vmem [shape: f32[1,64], index: 2, kind: input, shape index: {}]   ;;  %s228_s3 = inlined_call_operand.vmem [shape: bf16[16,64], index: 3, kind: output, shape index: {}]  }
   0x1   :  { %138 = vmatprep.subr.bf16.mxu0 %v151_v1  ;;  %v149_v2 = vld [vmem:[%s225_s1] sm:$0xff]   ;;  %142 = vmatprep.mubr.msk.bf16.mxu0 %vm152_vm0, %v151_v1  ;;  %v150_v3 = vld [vmem:[%s225_s1 + $0x8] sm:$0xff]   ;;  %vm32_vm2 = vcmask 519168   ;;  %v153_v25 = vmov 0  }
   0x2   :  { %v25_v4 = vshrl.u32 %v24_v0, 7  ;;  %139 = vmatpush3.bf16.msra.mxu0 %v149_v2  ;;  %v37_v5 = vld [vmem:[%s226_s0] sm:$0xff]  ;;  %v38_v6 = vld [vmem:[%s226_s0 + $0x8] sm:$0xff] }
   0x3   :  { %v19_v7 = vld [vmem:[%s227_s2] sm:$0x1]  ;;  %140 = vmatprep.subr.bf16.mxu0 %v151_v1  ;;  %v39_v10 = vpack.c.bf16 %v38_v6, %v37_v5 }
   0x4   :  { %v20_v8 = vpack.c.bf16 %v19_v7, %v19_v7  ;;  %v26_v9 = vsub.s32 0, %v25_v4 }
   0x6   :  { %v22_v11 = vpack.i.b16 %v20_v8, %v20_v8  ;;  %141 = vmatpush3.bf16.msra.mxu0 %v150_v3 }
   0x8   :  { %v27_v12 = vrot.slane %v22_v11, %v26_v9 }
   0x9   :  { %143 = vmatmul.mubr.msk.bf16.vlgmr.msra.gmra.mrb[0].mxu0 %vm56_vm1, %v39_v10 }
   0xa   :  { %v127_v13 = vcombine.low %v27_v12, %v27_v12 }
   0xc   :  { %33 = vst.msk [vmem:[%s228_s3] sm:$0xf] %vm32_vm2, %v127_v13  ;;  %34 = vst.msk [vmem:[%s228_s3 + $0x4] sm:$0xf] %vm32_vm2, %v127_v13 }
  0x13   :  { %v35_v14 = vld [vmem:[%s228_s3] sm:$0xf]  ;;  %v36_v18 = vld [vmem:[%s228_s3 + $0x4] sm:$0xf] }
  0xdc   :  { %v94_v15 = vpop.f32.mrb[0].mxu0 }
  0xdd   :  { %v133_v16 = vpack.c.bf16 %v94_v15, %v94_v15  ;;  %v144_v17 = vpop.f32.mrb[1].mxu0 }
  0xde   :  { %v97_v19 = vpop.f32.mrb[2].mxu0 }
  0xdf   :  { %v109_v20 = vadd.bf16 %v133_v16, %v35_v14  ;;  %v134_v21 = vpack.c.bf16 %v97_v19, %v97_v19  ;;  %v145_v22 = vpop.f32.mrb[3].mxu0 }
  0xe1   :  { %112 = vst.msk [vmem:[%s228_s3] sm:$0xf] %vm32_vm2, %v109_v20  ;;  %v110_v23 = vadd.bf16 %v134_v21, %v36_v18 }
  0xe3   :  { %113 = vst.msk [vmem:[%s228_s3 + $0x4] sm:$0xf] %vm32_vm2, %v110_v23 }
  0xe8   :  { %v117_v24 = vld [vmem:[%s228_s3] sm:$0xf] }
  0xe9   :  { %v119_v26 = vmax.bf16 %v153_v25, %v117_v24 }
  0xea   :  { %v118_v27 = vld [vmem:[%s228_s3 + $0x4] sm:$0xf] }
  0xeb   :  { %121 = vst.msk [vmem:[%s228_s3] sm:$0xf] %vm32_vm2, %v119_v26  ;;  %v120_v28 = vmax.bf16 %v153_v25, %v118_v27 }
  0xed   :  { %122 = vst.msk [vmem:[%s228_s3 + $0x4] sm:$0xf] %vm32_vm2, %v120_v28 }

</bundles_post_ra>
